<compile_context>
chip_gen: v6e
topology: v6e:2x2x1
jax: 0.10.0
libtpu: 0.0.40
codegen_flags: <defaults>
</compile_context>

<pallas_src>
import functools

import jax
import jax.numpy as jnp
import numpy as np
from jax import lax
from jax.experimental import pallas as pl
from jax.experimental.pallas import tpu as pltpu


def rcab_kernel(x_ref, hh_ref, ww_ref, img_ref,
                w1_ref, b1_ref, w2_ref, b2_ref,
                wd_ref, bd_ref, wu_ref, bu_ref,
                o_ref, *, H, W, K, nb):
    C, L = x_ref.shape           # channel-major block: (C, nb*H*W)
    HW = H * W
    pad = K // 2

    hh = hh_ref[...]             # (1, L) row index within its image
    ww = ww_ref[...]             # (1, L) col index within its image

    def im2col(src):
        """(C, L) -> (K*K*C, L): all K*K shifted, zero-masked taps stacked."""
        taps = []
        for ky in range(K):
            dy = ky - pad
            for kx in range(K):
                dx = kx - pad
                off = dy * W + dx
                if off == 0:
                    shifted = src
                else:
                    # out[i] = src[i + off]; lane roll rides the XLU slot.
                    shifted = pltpu.roll(src, shift=(-off) % L, axis=1)
                valid = ((hh + dy >= 0) & (hh + dy < H) &
                         (ww + dx >= 0) & (ww + dx < W))
                taps.append(jnp.where(valid, shifted, 0.0))
        return jnp.concatenate(taps, axis=0)        # (K*K*C, L)

    x = x_ref[...].astype(jnp.float32)

    # ---- conv1 (3x3 'same') + bias + ReLU: one contraction-depth K*K*C matmul
    h1 = jnp.dot(w1_ref[...], im2col(x), preferred_element_type=jnp.float32)
    h1 = jnp.maximum(h1 + b1_ref[...], 0.0)         # (C, L)

    # ---- conv2 (3x3 'same') + bias
    h2 = jnp.dot(w2_ref[...], im2col(h1), preferred_element_type=jnp.float32)
    h2 = h2 + b2_ref[...]                           # (C, L)

    # ---- channel attention: GAP -> 1x1 -> ReLU -> 1x1 -> sigmoid (VPU/XLU)
    def ca_gate(pooled_col):                        # (C, 1) -> (C, 1)
        d = jnp.sum(wd_ref[...] * pooled_col, axis=0, keepdims=True) + bd_ref[...]
        d = jnp.maximum(d, 0.0)                     # (1, C//r)
        y = jnp.sum(wu_ref[...] * d, axis=1, keepdims=True) + bu_ref[...]
        return jax.nn.sigmoid(y)                    # (C, 1)

    if nb == 1:
        gate = ca_gate(jnp.mean(h2, axis=1, keepdims=True))       # (C, 1)
    else:
        # Per-image segmented GAP / gate when several images share the lanes.
        img = img_ref[...]                          # (1, L) image id per lane
        gate = jnp.zeros_like(h2)
        inv_hw = 1.0 / HW
        for n in range(nb):                         # static unroll, nb is small
            sel = img == n
            pooled_n = jnp.sum(jnp.where(sel, h2, 0.0), axis=1,
                               keepdims=True) * inv_hw
            gate = jnp.where(sel, ca_gate(pooled_n), gate)

    # ---- scale + residual (lane-dense store)
    o_ref[...] = (h2 * gate + x).astype(o_ref.dtype)


def rcab_pallas(x, params, kernel_size=3, images_per_block=1):
    """x: (N, H, W, C) NHWC.  params: (w1, b1, w2, b2, wd, bd, wu, bu)."""
    N, H, W, C = x.shape
    K = kernel_size
    HW = H * W
    w1, b1, w2, b2, wd, bd, wu, bu = params

    nb = images_per_block
    assert N % nb == 0, "images_per_block must divide the batch size"
    G = N // nb
    L = nb * HW

    # ---- wrapper-side layout plumbing: channel-major, images folded on lanes
    x_cm = (jnp.transpose(x, (0, 3, 1, 2))          # NCHW
            .reshape(G, nb, C, HW)
            .transpose(0, 2, 1, 3)                  # (G, C, nb, HW)
            .reshape(G, C, L))

    # conv weights HWIO (K,K,Ci,Co) -> (Co, K*K*Ci), matching im2col tap order.
    w1r = jnp.transpose(w1, (3, 0, 1, 2)).reshape(C, K * K * C)
    w2r = jnp.transpose(w2, (3, 0, 1, 2)).reshape(C, K * K * C)
    b1c = jnp.reshape(b1, (C, 1))
    b2c = jnp.reshape(b2, (C, 1))
    bdr = jnp.reshape(bd, (1, -1))                  # (1, C//r)
    wut = jnp.transpose(wu)                         # (C, C//r)
    buc = jnp.reshape(bu, (C, 1))

    # Constant per-lane coordinate maps (avoids vector int div/mod in-kernel).
    pos = np.arange(L, dtype=np.int32)
    hh_map = jnp.asarray(((pos % HW) // W).reshape(1, L))
    ww_map = jnp.asarray((pos % W).reshape(1, L))
    img_map = jnp.asarray((pos // HW).reshape(1, L))

    def fullspec(a):
        nd = a.ndim
        return pl.BlockSpec(a.shape, lambda g, _nd=nd: (0,) * _nd)

    kern = functools.partial(rcab_kernel, H=H, W=W, K=K, nb=nb)

    out_cm = pl.pallas_call(
        kern,
        out_shape=jax.ShapeDtypeStruct((G, C, L), x.dtype),
        grid_spec=pltpu.PrefetchScalarGridSpec(
            num_scalar_prefetch=0,
            grid=(G,),
            in_specs=[
                pl.BlockSpec((None, C, L), lambda g: (g, 0, 0)),    # x block
                fullspec(hh_map), fullspec(ww_map), fullspec(img_map),
                fullspec(w1r), fullspec(b1c), fullspec(w2r), fullspec(b2c),
                fullspec(wd), fullspec(bdr), fullspec(wut), fullspec(buc),
            ],
            out_specs=pl.BlockSpec((None, C, L), lambda g: (g, 0, 0)),
        ),
        compiler_params=pltpu.CompilerParams(
            dimension_semantics=("parallel",)),     # v7x: image-blocks across TCs
    )(x_cm, hh_map, ww_map, img_map, w1r, b1c, w2r, b2c, wd, bdr, wut, buc)

    # back to NHWC
    return (out_cm.reshape(G, C, nb, HW)
            .transpose(0, 2, 1, 3)
            .reshape(N, C, H, W)
            .transpose(0, 2, 3, 1))


def rcab_reference(x, params, kernel_size=3):
    """Pure-JAX reference (NHWC / HWIO), mirrors PyTorch RCAB.forward."""
    w1, b1, w2, b2, wd, bd, wu, bu = params
    pad = kernel_size // 2
    dn = lax.conv_dimension_numbers(x.shape, w1.shape, ('NHWC', 'HWIO', 'NHWC'))
    h = lax.conv_general_dilated(x, w1, (1, 1), [(pad, pad), (pad, pad)],
                                 dimension_numbers=dn) + b1.reshape(1, 1, 1, -1)
    h = jnp.maximum(h, 0.0)
    h = lax.conv_general_dilated(h, w2, (1, 1), [(pad, pad), (pad, pad)],
                                 dimension_numbers=dn) + b2.reshape(1, 1, 1, -1)
    pooled = jnp.mean(h, axis=(1, 2))                      # (N, C)
    d = jnp.maximum(pooled @ wd + bd.reshape(1, -1), 0.0)
    y = jax.nn.sigmoid(d @ wu + bu.reshape(1, -1))
    return h * y[:, None, None, :] + x


if __name__ == "__main__":
    # RCAB(conv=default_conv, n_feat=16, kernel_size=3, reduction=4)
    N, H, W = 2, 16, 16
    C, K, R = 16, 3, 4
    Cr = C // R

    key = jax.random.PRNGKey(0)
    ks = jax.random.split(key, 9)
    x = jax.random.normal(ks[0], (N, H, W, C), jnp.float32)

    scale = 0.1
    params = (
        scale * jax.random.normal(ks[1], (K, K, C, C), jnp.float32),   # conv1 weight (HWIO)
        scale * jax.random.normal(ks[2], (1, C), jnp.float32),          # conv1 bias
        scale * jax.random.normal(ks[3], (K, K, C, C), jnp.float32),   # conv2 weight (HWIO)
        scale * jax.random.normal(ks[4], (1, C), jnp.float32),          # conv2 bias
        scale * jax.random.normal(ks[5], (C, Cr), jnp.float32),         # CA down (1x1 conv)
        scale * jax.random.normal(ks[6], (1, Cr), jnp.float32),         # CA down bias
        scale * jax.random.normal(ks[7], (Cr, C), jnp.float32),         # CA up (1x1 conv)
        scale * jax.random.normal(ks[8], (1, C), jnp.float32),          # CA up bias
    )

    ref = jax.block_until_ready(rcab_reference(x, params, kernel_size=K))

    # One image per grid step ("parallel" batch axis -> both v7x TensorCores).
    out_a = jax.block_until_ready(
        rcab_pallas(x, params, kernel_size=K, images_per_block=1))
    np.testing.assert_allclose(np.asarray(out_a), np.asarray(ref),
                               rtol=1e-4, atol=1e-4)

    # Whole batch folded along lanes into a single grid step (v5e/v6e mode).
    out_b = jax.block_until_ready(
        rcab_pallas(x, params, kernel_size=K, images_per_block=N))
    np.testing.assert_allclose(np.asarray(out_b), np.asarray(ref),
                               rtol=1e-4, atol=1e-4)

    print("KERNEL_OK")
</pallas_src>

<mosaic_0001>
module attributes {stable_mosaic.version = 11 : i64} {
  func.func @rcab_kernel(%arg0: i32, %arg1: memref<1x16x256xf32, #tpu.memory_space<vmem>>, %arg2: memref<1x256xi32, #tpu.memory_space<vmem>>, %arg3: memref<1x256xi32, #tpu.memory_space<vmem>>, %arg4: memref<1x256xi32, #tpu.memory_space<vmem>>, %arg5: memref<16x144xf32, #tpu.memory_space<vmem>>, %arg6: memref<16x1xf32, #tpu.memory_space<vmem>>, %arg7: memref<16x144xf32, #tpu.memory_space<vmem>>, %arg8: memref<16x1xf32, #tpu.memory_space<vmem>>, %arg9: memref<16x4xf32, #tpu.memory_space<vmem>>, %arg10: memref<1x4xf32, #tpu.memory_space<vmem>>, %arg11: memref<16x4xf32, #tpu.memory_space<vmem>>, %arg12: memref<16x1xf32, #tpu.memory_space<vmem>>, %arg13: memref<1x16x256xf32, #tpu.memory_space<vmem>>) attributes {dimension_semantics = [#tpu.dimension_semantics<parallel>], iteration_bounds = array<i64: 2>, scalar_prefetch = 0 : i64, scratch_operands = 0 : i64, tpu.core_type = #tpu.core_type<tc>, window_params = [{transform_indices = @transform_0, window_bounds = array<i64: 1, 16, 256>}, {pipeline_mode = #tpu.pipeline_mode<synchronous>, transform_indices = @transform_1, window_bounds = array<i64: 1, 256>}, {pipeline_mode = #tpu.pipeline_mode<synchronous>, transform_indices = @transform_2, window_bounds = array<i64: 1, 256>}, {pipeline_mode = #tpu.pipeline_mode<synchronous>, transform_indices = @transform_3, window_bounds = array<i64: 1, 256>}, {pipeline_mode = #tpu.pipeline_mode<synchronous>, transform_indices = @transform_4, window_bounds = array<i64: 16, 144>}, {pipeline_mode = #tpu.pipeline_mode<synchronous>, transform_indices = @transform_5, window_bounds = array<i64: 16, 1>}, {pipeline_mode = #tpu.pipeline_mode<synchronous>, transform_indices = @transform_6, window_bounds = array<i64: 16, 144>}, {pipeline_mode = #tpu.pipeline_mode<synchronous>, transform_indices = @transform_7, window_bounds = array<i64: 16, 1>}, {pipeline_mode = #tpu.pipeline_mode<synchronous>, transform_indices = @transform_8, window_bounds = array<i64: 16, 4>}, {pipeline_mode = #tpu.pipeline_mode<synchronous>, transform_indices = @transform_9, window_bounds = array<i64: 1, 4>}, {pipeline_mode = #tpu.pipeline_mode<synchronous>, transform_indices = @transform_10, window_bounds = array<i64: 16, 4>}, {pipeline_mode = #tpu.pipeline_mode<synchronous>, transform_indices = @transform_11, window_bounds = array<i64: 16, 1>}, {transform_indices = @transform_12, window_bounds = array<i64: 1, 16, 256>}]} {
    %c0 = arith.constant 0 : index
    %c0_0 = arith.constant 0 : index
    %0 = vector.load %arg2[%c0, %c0_0] : memref<1x256xi32, #tpu.memory_space<vmem>>, vector<1x256xi32>
    %c0_1 = arith.constant 0 : index
    %c0_2 = arith.constant 0 : index
    %1 = vector.load %arg3[%c0_1, %c0_2] : memref<1x256xi32, #tpu.memory_space<vmem>>, vector<1x256xi32>
    %c0_3 = arith.constant 0 : index
    %c0_4 = arith.constant 0 : index
    %c0_5 = arith.constant 0 : index
    %2 = vector.load %arg1[%c0_3, %c0_4, %c0_5] : memref<1x16x256xf32, #tpu.memory_space<vmem>>, vector<1x16x256xf32>
    %3 = vector.shape_cast %2 : vector<1x16x256xf32> to vector<16x256xf32>
    %c0_6 = arith.constant 0 : index
    %c0_7 = arith.constant 0 : index
    %4 = vector.load %arg5[%c0_6, %c0_7] : memref<16x144xf32, #tpu.memory_space<vmem>>, vector<16x144xf32>
    %c17_i32 = arith.constant 17 : i32
    %5 = tpu.dynamic_rotate %3 by %c17_i32 dim 1 : vector<16x256xf32>, i32 -> vector<16x256xf32>
    %c-1_i32 = arith.constant -1 : i32
    %6 = vector.broadcast %c-1_i32 : i32 to vector<1x256xi32>
    %7 = arith.addi %0, %6 : vector<1x256xi32>
    %c0_i32 = arith.constant 0 : i32
    %8 = vector.broadcast %c0_i32 : i32 to vector<1x256xi32>
    %9 = arith.cmpi sge, %7, %8 : vector<1x256xi32>
    %c-1_i32_8 = arith.constant -1 : i32
    %10 = vector.broadcast %c-1_i32_8 : i32 to vector<1x256xi32>
    %11 = arith.addi %0, %10 : vector<1x256xi32>
    %c16_i32 = arith.constant 16 : i32
    %12 = vector.broadcast %c16_i32 : i32 to vector<1x256xi32>
    %13 = arith.cmpi slt, %11, %12 : vector<1x256xi32>
    %14 = arith.andi %9, %13 : vector<1x256xi1>
    %c-1_i32_9 = arith.constant -1 : i32
    %15 = vector.broadcast %c-1_i32_9 : i32 to vector<1x256xi32>
    %16 = arith.addi %1, %15 : vector<1x256xi32>
    %c0_i32_10 = arith.constant 0 : i32
    %17 = vector.broadcast %c0_i32_10 : i32 to vector<1x256xi32>
    %18 = arith.cmpi sge, %16, %17 : vector<1x256xi32>
    %19 = arith.andi %14, %18 : vector<1x256xi1>
    %c-1_i32_11 = arith.constant -1 : i32
    %20 = vector.broadcast %c-1_i32_11 : i32 to vector<1x256xi32>
    %21 = arith.addi %1, %20 : vector<1x256xi32>
    %c16_i32_12 = arith.constant 16 : i32
    %22 = vector.broadcast %c16_i32_12 : i32 to vector<1x256xi32>
    %23 = arith.cmpi slt, %21, %22 : vector<1x256xi32>
    %24 = arith.andi %19, %23 : vector<1x256xi1>
    %cst = arith.constant 0.000000e+00 : f32
    %25 = vector.shape_cast %24 : vector<1x256xi1> to vector<1x256xi1>
    %26 = vector.broadcast %25 : vector<1x256xi1> to vector<16x256xi1>
    %27 = vector.broadcast %cst : f32 to vector<16x256xf32>
    %28 = arith.select %26, %5, %27 : vector<16x256xi1>, vector<16x256xf32>
    %c16_i32_13 = arith.constant 16 : i32
    %29 = tpu.dynamic_rotate %3 by %c16_i32_13 dim 1 : vector<16x256xf32>, i32 -> vector<16x256xf32>
    %c-1_i32_14 = arith.constant -1 : i32
    %30 = vector.broadcast %c-1_i32_14 : i32 to vector<1x256xi32>
    %31 = arith.addi %0, %30 : vector<1x256xi32>
    %c0_i32_15 = arith.constant 0 : i32
    %32 = vector.broadcast %c0_i32_15 : i32 to vector<1x256xi32>
    %33 = arith.cmpi sge, %31, %32 : vector<1x256xi32>
    %c-1_i32_16 = arith.constant -1 : i32
    %34 = vector.broadcast %c-1_i32_16 : i32 to vector<1x256xi32>
    %35 = arith.addi %0, %34 : vector<1x256xi32>
    %c16_i32_17 = arith.constant 16 : i32
    %36 = vector.broadcast %c16_i32_17 : i32 to vector<1x256xi32>
    %37 = arith.cmpi slt, %35, %36 : vector<1x256xi32>
    %38 = arith.andi %33, %37 : vector<1x256xi1>
    %c0_i32_18 = arith.constant 0 : i32
    %39 = vector.broadcast %c0_i32_18 : i32 to vector<1x256xi32>
    %40 = arith.addi %1, %39 : vector<1x256xi32>
    %c0_i32_19 = arith.constant 0 : i32
    %41 = vector.broadcast %c0_i32_19 : i32 to vector<1x256xi32>
    %42 = arith.cmpi sge, %40, %41 : vector<1x256xi32>
    %43 = arith.andi %38, %42 : vector<1x256xi1>
    %c0_i32_20 = arith.constant 0 : i32
    %44 = vector.broadcast %c0_i32_20 : i32 to vector<1x256xi32>
    %45 = arith.addi %1, %44 : vector<1x256xi32>
    %c16_i32_21 = arith.constant 16 : i32
    %46 = vector.broadcast %c16_i32_21 : i32 to vector<1x256xi32>
    %47 = arith.cmpi slt, %45, %46 : vector<1x256xi32>
    %48 = arith.andi %43, %47 : vector<1x256xi1>
    %cst_22 = arith.constant 0.000000e+00 : f32
    %49 = vector.shape_cast %48 : vector<1x256xi1> to vector<1x256xi1>
    %50 = vector.broadcast %49 : vector<1x256xi1> to vector<16x256xi1>
    %51 = vector.broadcast %cst_22 : f32 to vector<16x256xf32>
    %52 = arith.select %50, %29, %51 : vector<16x256xi1>, vector<16x256xf32>
    %c15_i32 = arith.constant 15 : i32
    %53 = tpu.dynamic_rotate %3 by %c15_i32 dim 1 : vector<16x256xf32>, i32 -> vector<16x256xf32>
    %c-1_i32_23 = arith.constant -1 : i32
    %54 = vector.broadcast %c-1_i32_23 : i32 to vector<1x256xi32>
    %55 = arith.addi %0, %54 : vector<1x256xi32>
    %c0_i32_24 = arith.constant 0 : i32
    %56 = vector.broadcast %c0_i32_24 : i32 to vector<1x256xi32>
    %57 = arith.cmpi sge, %55, %56 : vector<1x256xi32>
    %c-1_i32_25 = arith.constant -1 : i32
    %58 = vector.broadcast %c-1_i32_25 : i32 to vector<1x256xi32>
    %59 = arith.addi %0, %58 : vector<1x256xi32>
    %c16_i32_26 = arith.constant 16 : i32
    %60 = vector.broadcast %c16_i32_26 : i32 to vector<1x256xi32>
    %61 = arith.cmpi slt, %59, %60 : vector<1x256xi32>
    %62 = arith.andi %57, %61 : vector<1x256xi1>
    %c1_i32 = arith.constant 1 : i32
    %63 = vector.broadcast %c1_i32 : i32 to vector<1x256xi32>
    %64 = arith.addi %1, %63 : vector<1x256xi32>
    %c0_i32_27 = arith.constant 0 : i32
    %65 = vector.broadcast %c0_i32_27 : i32 to vector<1x256xi32>
    %66 = arith.cmpi sge, %64, %65 : vector<1x256xi32>
    %67 = arith.andi %62, %66 : vector<1x256xi1>
    %c1_i32_28 = arith.constant 1 : i32
    %68 = vector.broadcast %c1_i32_28 : i32 to vector<1x256xi32>
    %69 = arith.addi %1, %68 : vector<1x256xi32>
    %c16_i32_29 = arith.constant 16 : i32
    %70 = vector.broadcast %c16_i32_29 : i32 to vector<1x256xi32>
    %71 = arith.cmpi slt, %69, %70 : vector<1x256xi32>
    %72 = arith.andi %67, %71 : vector<1x256xi1>
    %cst_30 = arith.constant 0.000000e+00 : f32
    %73 = vector.shape_cast %72 : vector<1x256xi1> to vector<1x256xi1>
    %74 = vector.broadcast %73 : vector<1x256xi1> to vector<16x256xi1>
    %75 = vector.broadcast %cst_30 : f32 to vector<16x256xf32>
    %76 = arith.select %74, %53, %75 : vector<16x256xi1>, vector<16x256xf32>
    %c1_i32_31 = arith.constant 1 : i32
    %77 = tpu.dynamic_rotate %3 by %c1_i32_31 dim 1 : vector<16x256xf32>, i32 -> vector<16x256xf32>
    %c0_i32_32 = arith.constant 0 : i32
    %78 = vector.broadcast %c0_i32_32 : i32 to vector<1x256xi32>
    %79 = arith.addi %0, %78 : vector<1x256xi32>
    %c0_i32_33 = arith.constant 0 : i32
    %80 = vector.broadcast %c0_i32_33 : i32 to vector<1x256xi32>
    %81 = arith.cmpi sge, %79, %80 : vector<1x256xi32>
    %c0_i32_34 = arith.constant 0 : i32
    %82 = vector.broadcast %c0_i32_34 : i32 to vector<1x256xi32>
    %83 = arith.addi %0, %82 : vector<1x256xi32>
    %c16_i32_35 = arith.constant 16 : i32
    %84 = vector.broadcast %c16_i32_35 : i32 to vector<1x256xi32>
    %85 = arith.cmpi slt, %83, %84 : vector<1x256xi32>
    %86 = arith.andi %81, %85 : vector<1x256xi1>
    %c-1_i32_36 = arith.constant -1 : i32
    %87 = vector.broadcast %c-1_i32_36 : i32 to vector<1x256xi32>
    %88 = arith.addi %1, %87 : vector<1x256xi32>
    %c0_i32_37 = arith.constant 0 : i32
    %89 = vector.broadcast %c0_i32_37 : i32 to vector<1x256xi32>
    %90 = arith.cmpi sge, %88, %89 : vector<1x256xi32>
    %91 = arith.andi %86, %90 : vector<1x256xi1>
    %c-1_i32_38 = arith.constant -1 : i32
    %92 = vector.broadcast %c-1_i32_38 : i32 to vector<1x256xi32>
    %93 = arith.addi %1, %92 : vector<1x256xi32>
    %c16_i32_39 = arith.constant 16 : i32
    %94 = vector.broadcast %c16_i32_39 : i32 to vector<1x256xi32>
    %95 = arith.cmpi slt, %93, %94 : vector<1x256xi32>
    %96 = arith.andi %91, %95 : vector<1x256xi1>
    %cst_40 = arith.constant 0.000000e+00 : f32
    %97 = vector.shape_cast %96 : vector<1x256xi1> to vector<1x256xi1>
    %98 = vector.broadcast %97 : vector<1x256xi1> to vector<16x256xi1>
    %99 = vector.broadcast %cst_40 : f32 to vector<16x256xf32>
    %100 = arith.select %98, %77, %99 : vector<16x256xi1>, vector<16x256xf32>
    %c0_i32_41 = arith.constant 0 : i32
    %101 = vector.broadcast %c0_i32_41 : i32 to vector<1x256xi32>
    %102 = arith.addi %0, %101 : vector<1x256xi32>
    %c0_i32_42 = arith.constant 0 : i32
    %103 = vector.broadcast %c0_i32_42 : i32 to vector<1x256xi32>
    %104 = arith.cmpi sge, %102, %103 : vector<1x256xi32>
    %c0_i32_43 = arith.constant 0 : i32
    %105 = vector.broadcast %c0_i32_43 : i32 to vector<1x256xi32>
    %106 = arith.addi %0, %105 : vector<1x256xi32>
    %c16_i32_44 = arith.constant 16 : i32
    %107 = vector.broadcast %c16_i32_44 : i32 to vector<1x256xi32>
    %108 = arith.cmpi slt, %106, %107 : vector<1x256xi32>
    %109 = arith.andi %104, %108 : vector<1x256xi1>
    %c0_i32_45 = arith.constant 0 : i32
    %110 = vector.broadcast %c0_i32_45 : i32 to vector<1x256xi32>
    %111 = arith.addi %1, %110 : vector<1x256xi32>
    %c0_i32_46 = arith.constant 0 : i32
    %112 = vector.broadcast %c0_i32_46 : i32 to vector<1x256xi32>
    %113 = arith.cmpi sge, %111, %112 : vector<1x256xi32>
    %114 = arith.andi %109, %113 : vector<1x256xi1>
    %c0_i32_47 = arith.constant 0 : i32
    %115 = vector.broadcast %c0_i32_47 : i32 to vector<1x256xi32>
    %116 = arith.addi %1, %115 : vector<1x256xi32>
    %c16_i32_48 = arith.constant 16 : i32
    %117 = vector.broadcast %c16_i32_48 : i32 to vector<1x256xi32>
    %118 = arith.cmpi slt, %116, %117 : vector<1x256xi32>
    %119 = arith.andi %114, %118 : vector<1x256xi1>
    %cst_49 = arith.constant 0.000000e+00 : f32
    %120 = vector.shape_cast %119 : vector<1x256xi1> to vector<1x256xi1>
    %121 = vector.broadcast %120 : vector<1x256xi1> to vector<16x256xi1>
    %122 = vector.broadcast %cst_49 : f32 to vector<16x256xf32>
    %123 = arith.select %121, %3, %122 : vector<16x256xi1>, vector<16x256xf32>
    %c255_i32 = arith.constant 255 : i32
    %124 = tpu.dynamic_rotate %3 by %c255_i32 dim 1 : vector<16x256xf32>, i32 -> vector<16x256xf32>
    %c0_i32_50 = arith.constant 0 : i32
    %125 = vector.broadcast %c0_i32_50 : i32 to vector<1x256xi32>
    %126 = arith.addi %0, %125 : vector<1x256xi32>
    %c0_i32_51 = arith.constant 0 : i32
    %127 = vector.broadcast %c0_i32_51 : i32 to vector<1x256xi32>
    %128 = arith.cmpi sge, %126, %127 : vector<1x256xi32>
    %c0_i32_52 = arith.constant 0 : i32
    %129 = vector.broadcast %c0_i32_52 : i32 to vector<1x256xi32>
    %130 = arith.addi %0, %129 : vector<1x256xi32>
    %c16_i32_53 = arith.constant 16 : i32
    %131 = vector.broadcast %c16_i32_53 : i32 to vector<1x256xi32>
    %132 = arith.cmpi slt, %130, %131 : vector<1x256xi32>
    %133 = arith.andi %128, %132 : vector<1x256xi1>
    %c1_i32_54 = arith.constant 1 : i32
    %134 = vector.broadcast %c1_i32_54 : i32 to vector<1x256xi32>
    %135 = arith.addi %1, %134 : vector<1x256xi32>
    %c0_i32_55 = arith.constant 0 : i32
    %136 = vector.broadcast %c0_i32_55 : i32 to vector<1x256xi32>
    %137 = arith.cmpi sge, %135, %136 : vector<1x256xi32>
    %138 = arith.andi %133, %137 : vector<1x256xi1>
    %c1_i32_56 = arith.constant 1 : i32
    %139 = vector.broadcast %c1_i32_56 : i32 to vector<1x256xi32>
    %140 = arith.addi %1, %139 : vector<1x256xi32>
    %c16_i32_57 = arith.constant 16 : i32
    %141 = vector.broadcast %c16_i32_57 : i32 to vector<1x256xi32>
    %142 = arith.cmpi slt, %140, %141 : vector<1x256xi32>
    %143 = arith.andi %138, %142 : vector<1x256xi1>
    %cst_58 = arith.constant 0.000000e+00 : f32
    %144 = vector.shape_cast %143 : vector<1x256xi1> to vector<1x256xi1>
    %145 = vector.broadcast %144 : vector<1x256xi1> to vector<16x256xi1>
    %146 = vector.broadcast %cst_58 : f32 to vector<16x256xf32>
    %147 = arith.select %145, %124, %146 : vector<16x256xi1>, vector<16x256xf32>
    %c241_i32 = arith.constant 241 : i32
    %148 = tpu.dynamic_rotate %3 by %c241_i32 dim 1 : vector<16x256xf32>, i32 -> vector<16x256xf32>
    %c1_i32_59 = arith.constant 1 : i32
    %149 = vector.broadcast %c1_i32_59 : i32 to vector<1x256xi32>
    %150 = arith.addi %0, %149 : vector<1x256xi32>
    %c0_i32_60 = arith.constant 0 : i32
    %151 = vector.broadcast %c0_i32_60 : i32 to vector<1x256xi32>
    %152 = arith.cmpi sge, %150, %151 : vector<1x256xi32>
    %c1_i32_61 = arith.constant 1 : i32
    %153 = vector.broadcast %c1_i32_61 : i32 to vector<1x256xi32>
    %154 = arith.addi %0, %153 : vector<1x256xi32>
    %c16_i32_62 = arith.constant 16 : i32
    %155 = vector.broadcast %c16_i32_62 : i32 to vector<1x256xi32>
    %156 = arith.cmpi slt, %154, %155 : vector<1x256xi32>
    %157 = arith.andi %152, %156 : vector<1x256xi1>
    %c-1_i32_63 = arith.constant -1 : i32
    %158 = vector.broadcast %c-1_i32_63 : i32 to vector<1x256xi32>
    %159 = arith.addi %1, %158 : vector<1x256xi32>
    %c0_i32_64 = arith.constant 0 : i32
    %160 = vector.broadcast %c0_i32_64 : i32 to vector<1x256xi32>
    %161 = arith.cmpi sge, %159, %160 : vector<1x256xi32>
    %162 = arith.andi %157, %161 : vector<1x256xi1>
    %c-1_i32_65 = arith.constant -1 : i32
    %163 = vector.broadcast %c-1_i32_65 : i32 to vector<1x256xi32>
    %164 = arith.addi %1, %163 : vector<1x256xi32>
    %c16_i32_66 = arith.constant 16 : i32
    %165 = vector.broadcast %c16_i32_66 : i32 to vector<1x256xi32>
    %166 = arith.cmpi slt, %164, %165 : vector<1x256xi32>
    %167 = arith.andi %162, %166 : vector<1x256xi1>
    %cst_67 = arith.constant 0.000000e+00 : f32
    %168 = vector.shape_cast %167 : vector<1x256xi1> to vector<1x256xi1>
    %169 = vector.broadcast %168 : vector<1x256xi1> to vector<16x256xi1>
    %170 = vector.broadcast %cst_67 : f32 to vector<16x256xf32>
    %171 = arith.select %169, %148, %170 : vector<16x256xi1>, vector<16x256xf32>
    %c240_i32 = arith.constant 240 : i32
    %172 = tpu.dynamic_rotate %3 by %c240_i32 dim 1 : vector<16x256xf32>, i32 -> vector<16x256xf32>
    %c1_i32_68 = arith.constant 1 : i32
    %173 = vector.broadcast %c1_i32_68 : i32 to vector<1x256xi32>
    %174 = arith.addi %0, %173 : vector<1x256xi32>
    %c0_i32_69 = arith.constant 0 : i32
    %175 = vector.broadcast %c0_i32_69 : i32 to vector<1x256xi32>
    %176 = arith.cmpi sge, %174, %175 : vector<1x256xi32>
    %c1_i32_70 = arith.constant 1 : i32
    %177 = vector.broadcast %c1_i32_70 : i32 to vector<1x256xi32>
    %178 = arith.addi %0, %177 : vector<1x256xi32>
    %c16_i32_71 = arith.constant 16 : i32
    %179 = vector.broadcast %c16_i32_71 : i32 to vector<1x256xi32>
    %180 = arith.cmpi slt, %178, %179 : vector<1x256xi32>
    %181 = arith.andi %176, %180 : vector<1x256xi1>
    %c0_i32_72 = arith.constant 0 : i32
    %182 = vector.broadcast %c0_i32_72 : i32 to vector<1x256xi32>
    %183 = arith.addi %1, %182 : vector<1x256xi32>
    %c0_i32_73 = arith.constant 0 : i32
    %184 = vector.broadcast %c0_i32_73 : i32 to vector<1x256xi32>
    %185 = arith.cmpi sge, %183, %184 : vector<1x256xi32>
    %186 = arith.andi %181, %185 : vector<1x256xi1>
    %c0_i32_74 = arith.constant 0 : i32
    %187 = vector.broadcast %c0_i32_74 : i32 to vector<1x256xi32>
    %188 = arith.addi %1, %187 : vector<1x256xi32>
    %c16_i32_75 = arith.constant 16 : i32
    %189 = vector.broadcast %c16_i32_75 : i32 to vector<1x256xi32>
    %190 = arith.cmpi slt, %188, %189 : vector<1x256xi32>
    %191 = arith.andi %186, %190 : vector<1x256xi1>
    %cst_76 = arith.constant 0.000000e+00 : f32
    %192 = vector.shape_cast %191 : vector<1x256xi1> to vector<1x256xi1>
    %193 = vector.broadcast %192 : vector<1x256xi1> to vector<16x256xi1>
    %194 = vector.broadcast %cst_76 : f32 to vector<16x256xf32>
    %195 = arith.select %193, %172, %194 : vector<16x256xi1>, vector<16x256xf32>
    %c239_i32 = arith.constant 239 : i32
    %196 = tpu.dynamic_rotate %3 by %c239_i32 dim 1 : vector<16x256xf32>, i32 -> vector<16x256xf32>
    %c1_i32_77 = arith.constant 1 : i32
    %197 = vector.broadcast %c1_i32_77 : i32 to vector<1x256xi32>
    %198 = arith.addi %0, %197 : vector<1x256xi32>
    %c0_i32_78 = arith.constant 0 : i32
    %199 = vector.broadcast %c0_i32_78 : i32 to vector<1x256xi32>
    %200 = arith.cmpi sge, %198, %199 : vector<1x256xi32>
    %c1_i32_79 = arith.constant 1 : i32
    %201 = vector.broadcast %c1_i32_79 : i32 to vector<1x256xi32>
    %202 = arith.addi %0, %201 : vector<1x256xi32>
    %c16_i32_80 = arith.constant 16 : i32
    %203 = vector.broadcast %c16_i32_80 : i32 to vector<1x256xi32>
    %204 = arith.cmpi slt, %202, %203 : vector<1x256xi32>
    %205 = arith.andi %200, %204 : vector<1x256xi1>
    %c1_i32_81 = arith.constant 1 : i32
    %206 = vector.broadcast %c1_i32_81 : i32 to vector<1x256xi32>
    %207 = arith.addi %1, %206 : vector<1x256xi32>
    %c0_i32_82 = arith.constant 0 : i32
    %208 = vector.broadcast %c0_i32_82 : i32 to vector<1x256xi32>
    %209 = arith.cmpi sge, %207, %208 : vector<1x256xi32>
    %210 = arith.andi %205, %209 : vector<1x256xi1>
    %c1_i32_83 = arith.constant 1 : i32
    %211 = vector.broadcast %c1_i32_83 : i32 to vector<1x256xi32>
    %212 = arith.addi %1, %211 : vector<1x256xi32>
    %c16_i32_84 = arith.constant 16 : i32
    %213 = vector.broadcast %c16_i32_84 : i32 to vector<1x256xi32>
    %214 = arith.cmpi slt, %212, %213 : vector<1x256xi32>
    %215 = arith.andi %210, %214 : vector<1x256xi1>
    %cst_85 = arith.constant 0.000000e+00 : f32
    %216 = vector.shape_cast %215 : vector<1x256xi1> to vector<1x256xi1>
    %217 = vector.broadcast %216 : vector<1x256xi1> to vector<16x256xi1>
    %218 = vector.broadcast %cst_85 : f32 to vector<16x256xf32>
    %219 = arith.select %217, %196, %218 : vector<16x256xi1>, vector<16x256xf32>
    %220 = tpu.concatenate %28, %52, %76, %100, %123, %147, %171, %195, %219 in 0 : vector<16x256xf32>, vector<16x256xf32>, vector<16x256xf32>, vector<16x256xf32>, vector<16x256xf32>, vector<16x256xf32>, vector<16x256xf32>, vector<16x256xf32>, vector<16x256xf32> -> vector<144x256xf32>
    %cst_86 = arith.constant dense<0.000000e+00> : vector<16x256xf32>
    %221 = tpu.matmul %4, %220, %cst_86 {dimension_numbers = #tpu.dot_dimension_numbers<[1], [0], [0], [1], [0, 0, 1, 1], [], []>} : vector<16x144xf32>, vector<144x256xf32>, vector<16x256xf32> -> vector<16x256xf32>
    %c0_87 = arith.constant 0 : index
    %c0_88 = arith.constant 0 : index
    %222 = vector.load %arg6[%c0_87, %c0_88] : memref<16x1xf32, #tpu.memory_space<vmem>>, vector<16x1xf32>
    %223 = vector.broadcast %222 : vector<16x1xf32> to vector<16x256xf32>
    %224 = arith.addf %221, %223 : vector<16x256xf32>
    %cst_89 = arith.constant 0.000000e+00 : f32
    %225 = vector.broadcast %cst_89 : f32 to vector<16x256xf32>
    %226 = arith.maximumf %224, %225 : vector<16x256xf32>
    %c0_90 = arith.constant 0 : index
    %c0_91 = arith.constant 0 : index
    %227 = vector.load %arg7[%c0_90, %c0_91] : memref<16x144xf32, #tpu.memory_space<vmem>>, vector<16x144xf32>
    %c17_i32_92 = arith.constant 17 : i32
    %228 = tpu.dynamic_rotate %226 by %c17_i32_92 dim 1 : vector<16x256xf32>, i32 -> vector<16x256xf32>
    %c-1_i32_93 = arith.constant -1 : i32
    %229 = vector.broadcast %c-1_i32_93 : i32 to vector<1x256xi32>
    %230 = arith.addi %0, %229 : vector<1x256xi32>
    %c0_i32_94 = arith.constant 0 : i32
    %231 = vector.broadcast %c0_i32_94 : i32 to vector<1x256xi32>
    %232 = arith.cmpi sge, %230, %231 : vector<1x256xi32>
    %c-1_i32_95 = arith.constant -1 : i32
    %233 = vector.broadcast %c-1_i32_95 : i32 to vector<1x256xi32>
    %234 = arith.addi %0, %233 : vector<1x256xi32>
    %c16_i32_96 = arith.constant 16 : i32
    %235 = vector.broadcast %c16_i32_96 : i32 to vector<1x256xi32>
    %236 = arith.cmpi slt, %234, %235 : vector<1x256xi32>
    %237 = arith.andi %232, %236 : vector<1x256xi1>
    %c-1_i32_97 = arith.constant -1 : i32
    %238 = vector.broadcast %c-1_i32_97 : i32 to vector<1x256xi32>
    %239 = arith.addi %1, %238 : vector<1x256xi32>
    %c0_i32_98 = arith.constant 0 : i32
    %240 = vector.broadcast %c0_i32_98 : i32 to vector<1x256xi32>
    %241 = arith.cmpi sge, %239, %240 : vector<1x256xi32>
    %242 = arith.andi %237, %241 : vector<1x256xi1>
    %c-1_i32_99 = arith.constant -1 : i32
    %243 = vector.broadcast %c-1_i32_99 : i32 to vector<1x256xi32>
    %244 = arith.addi %1, %243 : vector<1x256xi32>
    %c16_i32_100 = arith.constant 16 : i32
    %245 = vector.broadcast %c16_i32_100 : i32 to vector<1x256xi32>
    %246 = arith.cmpi slt, %244, %245 : vector<1x256xi32>
    %247 = arith.andi %242, %246 : vector<1x256xi1>
    %cst_101 = arith.constant 0.000000e+00 : f32
    %248 = vector.shape_cast %247 : vector<1x256xi1> to vector<1x256xi1>
    %249 = vector.broadcast %248 : vector<1x256xi1> to vector<16x256xi1>
    %250 = vector.broadcast %cst_101 : f32 to vector<16x256xf32>
    %251 = arith.select %249, %228, %250 : vector<16x256xi1>, vector<16x256xf32>
    %c16_i32_102 = arith.constant 16 : i32
    %252 = tpu.dynamic_rotate %226 by %c16_i32_102 dim 1 : vector<16x256xf32>, i32 -> vector<16x256xf32>
    %c-1_i32_103 = arith.constant -1 : i32
    %253 = vector.broadcast %c-1_i32_103 : i32 to vector<1x256xi32>
    %254 = arith.addi %0, %253 : vector<1x256xi32>
    %c0_i32_104 = arith.constant 0 : i32
    %255 = vector.broadcast %c0_i32_104 : i32 to vector<1x256xi32>
    %256 = arith.cmpi sge, %254, %255 : vector<1x256xi32>
    %c-1_i32_105 = arith.constant -1 : i32
    %257 = vector.broadcast %c-1_i32_105 : i32 to vector<1x256xi32>
    %258 = arith.addi %0, %257 : vector<1x256xi32>
    %c16_i32_106 = arith.constant 16 : i32
    %259 = vector.broadcast %c16_i32_106 : i32 to vector<1x256xi32>
    %260 = arith.cmpi slt, %258, %259 : vector<1x256xi32>
    %261 = arith.andi %256, %260 : vector<1x256xi1>
    %c0_i32_107 = arith.constant 0 : i32
    %262 = vector.broadcast %c0_i32_107 : i32 to vector<1x256xi32>
    %263 = arith.addi %1, %262 : vector<1x256xi32>
    %c0_i32_108 = arith.constant 0 : i32
    %264 = vector.broadcast %c0_i32_108 : i32 to vector<1x256xi32>
    %265 = arith.cmpi sge, %263, %264 : vector<1x256xi32>
    %266 = arith.andi %261, %265 : vector<1x256xi1>
    %c0_i32_109 = arith.constant 0 : i32
    %267 = vector.broadcast %c0_i32_109 : i32 to vector<1x256xi32>
    %268 = arith.addi %1, %267 : vector<1x256xi32>
    %c16_i32_110 = arith.constant 16 : i32
    %269 = vector.broadcast %c16_i32_110 : i32 to vector<1x256xi32>
    %270 = arith.cmpi slt, %268, %269 : vector<1x256xi32>
    %271 = arith.andi %266, %270 : vector<1x256xi1>
    %cst_111 = arith.constant 0.000000e+00 : f32
    %272 = vector.shape_cast %271 : vector<1x256xi1> to vector<1x256xi1>
    %273 = vector.broadcast %272 : vector<1x256xi1> to vector<16x256xi1>
    %274 = vector.broadcast %cst_111 : f32 to vector<16x256xf32>
    %275 = arith.select %273, %252, %274 : vector<16x256xi1>, vector<16x256xf32>
    %c15_i32_112 = arith.constant 15 : i32
    %276 = tpu.dynamic_rotate %226 by %c15_i32_112 dim 1 : vector<16x256xf32>, i32 -> vector<16x256xf32>
    %c-1_i32_113 = arith.constant -1 : i32
    %277 = vector.broadcast %c-1_i32_113 : i32 to vector<1x256xi32>
    %278 = arith.addi %0, %277 : vector<1x256xi32>
    %c0_i32_114 = arith.constant 0 : i32
    %279 = vector.broadcast %c0_i32_114 : i32 to vector<1x256xi32>
    %280 = arith.cmpi sge, %278, %279 : vector<1x256xi32>
    %c-1_i32_115 = arith.constant -1 : i32
    %281 = vector.broadcast %c-1_i32_115 : i32 to vector<1x256xi32>
    %282 = arith.addi %0, %281 : vector<1x256xi32>
    %c16_i32_116 = arith.constant 16 : i32
    %283 = vector.broadcast %c16_i32_116 : i32 to vector<1x256xi32>
    %284 = arith.cmpi slt, %282, %283 : vector<1x256xi32>
    %285 = arith.andi %280, %284 : vector<1x256xi1>
    %c1_i32_117 = arith.constant 1 : i32
    %286 = vector.broadcast %c1_i32_117 : i32 to vector<1x256xi32>
    %287 = arith.addi %1, %286 : vector<1x256xi32>
    %c0_i32_118 = arith.constant 0 : i32
    %288 = vector.broadcast %c0_i32_118 : i32 to vector<1x256xi32>
    %289 = arith.cmpi sge, %287, %288 : vector<1x256xi32>
    %290 = arith.andi %285, %289 : vector<1x256xi1>
    %c1_i32_119 = arith.constant 1 : i32
    %291 = vector.broadcast %c1_i32_119 : i32 to vector<1x256xi32>
    %292 = arith.addi %1, %291 : vector<1x256xi32>
    %c16_i32_120 = arith.constant 16 : i32
    %293 = vector.broadcast %c16_i32_120 : i32 to vector<1x256xi32>
    %294 = arith.cmpi slt, %292, %293 : vector<1x256xi32>
    %295 = arith.andi %290, %294 : vector<1x256xi1>
    %cst_121 = arith.constant 0.000000e+00 : f32
    %296 = vector.shape_cast %295 : vector<1x256xi1> to vector<1x256xi1>
    %297 = vector.broadcast %296 : vector<1x256xi1> to vector<16x256xi1>
    %298 = vector.broadcast %cst_121 : f32 to vector<16x256xf32>
    %299 = arith.select %297, %276, %298 : vector<16x256xi1>, vector<16x256xf32>
    %c1_i32_122 = arith.constant 1 : i32
    %300 = tpu.dynamic_rotate %226 by %c1_i32_122 dim 1 : vector<16x256xf32>, i32 -> vector<16x256xf32>
    %c0_i32_123 = arith.constant 0 : i32
    %301 = vector.broadcast %c0_i32_123 : i32 to vector<1x256xi32>
    %302 = arith.addi %0, %301 : vector<1x256xi32>
    %c0_i32_124 = arith.constant 0 : i32
    %303 = vector.broadcast %c0_i32_124 : i32 to vector<1x256xi32>
    %304 = arith.cmpi sge, %302, %303 : vector<1x256xi32>
    %c0_i32_125 = arith.constant 0 : i32
    %305 = vector.broadcast %c0_i32_125 : i32 to vector<1x256xi32>
    %306 = arith.addi %0, %305 : vector<1x256xi32>
    %c16_i32_126 = arith.constant 16 : i32
    %307 = vector.broadcast %c16_i32_126 : i32 to vector<1x256xi32>
    %308 = arith.cmpi slt, %306, %307 : vector<1x256xi32>
    %309 = arith.andi %304, %308 : vector<1x256xi1>
    %c-1_i32_127 = arith.constant -1 : i32
    %310 = vector.broadcast %c-1_i32_127 : i32 to vector<1x256xi32>
    %311 = arith.addi %1, %310 : vector<1x256xi32>
    %c0_i32_128 = arith.constant 0 : i32
    %312 = vector.broadcast %c0_i32_128 : i32 to vector<1x256xi32>
    %313 = arith.cmpi sge, %311, %312 : vector<1x256xi32>
    %314 = arith.andi %309, %313 : vector<1x256xi1>
    %c-1_i32_129 = arith.constant -1 : i32
    %315 = vector.broadcast %c-1_i32_129 : i32 to vector<1x256xi32>
    %316 = arith.addi %1, %315 : vector<1x256xi32>
    %c16_i32_130 = arith.constant 16 : i32
    %317 = vector.broadcast %c16_i32_130 : i32 to vector<1x256xi32>
    %318 = arith.cmpi slt, %316, %317 : vector<1x256xi32>
    %319 = arith.andi %314, %318 : vector<1x256xi1>
    %cst_131 = arith.constant 0.000000e+00 : f32
    %320 = vector.shape_cast %319 : vector<1x256xi1> to vector<1x256xi1>
    %321 = vector.broadcast %320 : vector<1x256xi1> to vector<16x256xi1>
    %322 = vector.broadcast %cst_131 : f32 to vector<16x256xf32>
    %323 = arith.select %321, %300, %322 : vector<16x256xi1>, vector<16x256xf32>
    %c0_i32_132 = arith.constant 0 : i32
    %324 = vector.broadcast %c0_i32_132 : i32 to vector<1x256xi32>
    %325 = arith.addi %0, %324 : vector<1x256xi32>
    %c0_i32_133 = arith.constant 0 : i32
    %326 = vector.broadcast %c0_i32_133 : i32 to vector<1x256xi32>
    %327 = arith.cmpi sge, %325, %326 : vector<1x256xi32>
    %c0_i32_134 = arith.constant 0 : i32
    %328 = vector.broadcast %c0_i32_134 : i32 to vector<1x256xi32>
    %329 = arith.addi %0, %328 : vector<1x256xi32>
    %c16_i32_135 = arith.constant 16 : i32
    %330 = vector.broadcast %c16_i32_135 : i32 to vector<1x256xi32>
    %331 = arith.cmpi slt, %329, %330 : vector<1x256xi32>
    %332 = arith.andi %327, %331 : vector<1x256xi1>
    %c0_i32_136 = arith.constant 0 : i32
    %333 = vector.broadcast %c0_i32_136 : i32 to vector<1x256xi32>
    %334 = arith.addi %1, %333 : vector<1x256xi32>
    %c0_i32_137 = arith.constant 0 : i32
    %335 = vector.broadcast %c0_i32_137 : i32 to vector<1x256xi32>
    %336 = arith.cmpi sge, %334, %335 : vector<1x256xi32>
    %337 = arith.andi %332, %336 : vector<1x256xi1>
    %c0_i32_138 = arith.constant 0 : i32
    %338 = vector.broadcast %c0_i32_138 : i32 to vector<1x256xi32>
    %339 = arith.addi %1, %338 : vector<1x256xi32>
    %c16_i32_139 = arith.constant 16 : i32
    %340 = vector.broadcast %c16_i32_139 : i32 to vector<1x256xi32>
    %341 = arith.cmpi slt, %339, %340 : vector<1x256xi32>
    %342 = arith.andi %337, %341 : vector<1x256xi1>
    %cst_140 = arith.constant 0.000000e+00 : f32
    %343 = vector.shape_cast %342 : vector<1x256xi1> to vector<1x256xi1>
    %344 = vector.broadcast %343 : vector<1x256xi1> to vector<16x256xi1>
    %345 = vector.broadcast %cst_140 : f32 to vector<16x256xf32>
    %346 = arith.select %344, %226, %345 : vector<16x256xi1>, vector<16x256xf32>
    %c255_i32_141 = arith.constant 255 : i32
    %347 = tpu.dynamic_rotate %226 by %c255_i32_141 dim 1 : vector<16x256xf32>, i32 -> vector<16x256xf32>
    %c0_i32_142 = arith.constant 0 : i32
    %348 = vector.broadcast %c0_i32_142 : i32 to vector<1x256xi32>
    %349 = arith.addi %0, %348 : vector<1x256xi32>
    %c0_i32_143 = arith.constant 0 : i32
    %350 = vector.broadcast %c0_i32_143 : i32 to vector<1x256xi32>
    %351 = arith.cmpi sge, %349, %350 : vector<1x256xi32>
    %c0_i32_144 = arith.constant 0 : i32
    %352 = vector.broadcast %c0_i32_144 : i32 to vector<1x256xi32>
    %353 = arith.addi %0, %352 : vector<1x256xi32>
    %c16_i32_145 = arith.constant 16 : i32
    %354 = vector.broadcast %c16_i32_145 : i32 to vector<1x256xi32>
    %355 = arith.cmpi slt, %353, %354 : vector<1x256xi32>
    %356 = arith.andi %351, %355 : vector<1x256xi1>
    %c1_i32_146 = arith.constant 1 : i32
    %357 = vector.broadcast %c1_i32_146 : i32 to vector<1x256xi32>
    %358 = arith.addi %1, %357 : vector<1x256xi32>
    %c0_i32_147 = arith.constant 0 : i32
    %359 = vector.broadcast %c0_i32_147 : i32 to vector<1x256xi32>
    %360 = arith.cmpi sge, %358, %359 : vector<1x256xi32>
    %361 = arith.andi %356, %360 : vector<1x256xi1>
    %c1_i32_148 = arith.constant 1 : i32
    %362 = vector.broadcast %c1_i32_148 : i32 to vector<1x256xi32>
    %363 = arith.addi %1, %362 : vector<1x256xi32>
    %c16_i32_149 = arith.constant 16 : i32
    %364 = vector.broadcast %c16_i32_149 : i32 to vector<1x256xi32>
    %365 = arith.cmpi slt, %363, %364 : vector<1x256xi32>
    %366 = arith.andi %361, %365 : vector<1x256xi1>
    %cst_150 = arith.constant 0.000000e+00 : f32
    %367 = vector.shape_cast %366 : vector<1x256xi1> to vector<1x256xi1>
    %368 = vector.broadcast %367 : vector<1x256xi1> to vector<16x256xi1>
    %369 = vector.broadcast %cst_150 : f32 to vector<16x256xf32>
    %370 = arith.select %368, %347, %369 : vector<16x256xi1>, vector<16x256xf32>
    %c241_i32_151 = arith.constant 241 : i32
    %371 = tpu.dynamic_rotate %226 by %c241_i32_151 dim 1 : vector<16x256xf32>, i32 -> vector<16x256xf32>
    %c1_i32_152 = arith.constant 1 : i32
    %372 = vector.broadcast %c1_i32_152 : i32 to vector<1x256xi32>
    %373 = arith.addi %0, %372 : vector<1x256xi32>
    %c0_i32_153 = arith.constant 0 : i32
    %374 = vector.broadcast %c0_i32_153 : i32 to vector<1x256xi32>
    %375 = arith.cmpi sge, %373, %374 : vector<1x256xi32>
    %c1_i32_154 = arith.constant 1 : i32
    %376 = vector.broadcast %c1_i32_154 : i32 to vector<1x256xi32>
    %377 = arith.addi %0, %376 : vector<1x256xi32>
    %c16_i32_155 = arith.constant 16 : i32
    %378 = vector.broadcast %c16_i32_155 : i32 to vector<1x256xi32>
    %379 = arith.cmpi slt, %377, %378 : vector<1x256xi32>
    %380 = arith.andi %375, %379 : vector<1x256xi1>
    %c-1_i32_156 = arith.constant -1 : i32
    %381 = vector.broadcast %c-1_i32_156 : i32 to vector<1x256xi32>
    %382 = arith.addi %1, %381 : vector<1x256xi32>
    %c0_i32_157 = arith.constant 0 : i32
    %383 = vector.broadcast %c0_i32_157 : i32 to vector<1x256xi32>
    %384 = arith.cmpi sge, %382, %383 : vector<1x256xi32>
    %385 = arith.andi %380, %384 : vector<1x256xi1>
    %c-1_i32_158 = arith.constant -1 : i32
    %386 = vector.broadcast %c-1_i32_158 : i32 to vector<1x256xi32>
    %387 = arith.addi %1, %386 : vector<1x256xi32>
    %c16_i32_159 = arith.constant 16 : i32
    %388 = vector.broadcast %c16_i32_159 : i32 to vector<1x256xi32>
    %389 = arith.cmpi slt, %387, %388 : vector<1x256xi32>
    %390 = arith.andi %385, %389 : vector<1x256xi1>
    %cst_160 = arith.constant 0.000000e+00 : f32
    %391 = vector.shape_cast %390 : vector<1x256xi1> to vector<1x256xi1>
    %392 = vector.broadcast %391 : vector<1x256xi1> to vector<16x256xi1>
    %393 = vector.broadcast %cst_160 : f32 to vector<16x256xf32>
    %394 = arith.select %392, %371, %393 : vector<16x256xi1>, vector<16x256xf32>
    %c240_i32_161 = arith.constant 240 : i32
    %395 = tpu.dynamic_rotate %226 by %c240_i32_161 dim 1 : vector<16x256xf32>, i32 -> vector<16x256xf32>
    %c1_i32_162 = arith.constant 1 : i32
    %396 = vector.broadcast %c1_i32_162 : i32 to vector<1x256xi32>
    %397 = arith.addi %0, %396 : vector<1x256xi32>
    %c0_i32_163 = arith.constant 0 : i32
    %398 = vector.broadcast %c0_i32_163 : i32 to vector<1x256xi32>
    %399 = arith.cmpi sge, %397, %398 : vector<1x256xi32>
    %c1_i32_164 = arith.constant 1 : i32
    %400 = vector.broadcast %c1_i32_164 : i32 to vector<1x256xi32>
    %401 = arith.addi %0, %400 : vector<1x256xi32>
    %c16_i32_165 = arith.constant 16 : i32
    %402 = vector.broadcast %c16_i32_165 : i32 to vector<1x256xi32>
    %403 = arith.cmpi slt, %401, %402 : vector<1x256xi32>
    %404 = arith.andi %399, %403 : vector<1x256xi1>
    %c0_i32_166 = arith.constant 0 : i32
    %405 = vector.broadcast %c0_i32_166 : i32 to vector<1x256xi32>
    %406 = arith.addi %1, %405 : vector<1x256xi32>
    %c0_i32_167 = arith.constant 0 : i32
    %407 = vector.broadcast %c0_i32_167 : i32 to vector<1x256xi32>
    %408 = arith.cmpi sge, %406, %407 : vector<1x256xi32>
    %409 = arith.andi %404, %408 : vector<1x256xi1>
    %c0_i32_168 = arith.constant 0 : i32
    %410 = vector.broadcast %c0_i32_168 : i32 to vector<1x256xi32>
    %411 = arith.addi %1, %410 : vector<1x256xi32>
    %c16_i32_169 = arith.constant 16 : i32
    %412 = vector.broadcast %c16_i32_169 : i32 to vector<1x256xi32>
    %413 = arith.cmpi slt, %411, %412 : vector<1x256xi32>
    %414 = arith.andi %409, %413 : vector<1x256xi1>
    %cst_170 = arith.constant 0.000000e+00 : f32
    %415 = vector.shape_cast %414 : vector<1x256xi1> to vector<1x256xi1>
    %416 = vector.broadcast %415 : vector<1x256xi1> to vector<16x256xi1>
    %417 = vector.broadcast %cst_170 : f32 to vector<16x256xf32>
    %418 = arith.select %416, %395, %417 : vector<16x256xi1>, vector<16x256xf32>
    %c239_i32_171 = arith.constant 239 : i32
    %419 = tpu.dynamic_rotate %226 by %c239_i32_171 dim 1 : vector<16x256xf32>, i32 -> vector<16x256xf32>
    %c1_i32_172 = arith.constant 1 : i32
    %420 = vector.broadcast %c1_i32_172 : i32 to vector<1x256xi32>
    %421 = arith.addi %0, %420 : vector<1x256xi32>
    %c0_i32_173 = arith.constant 0 : i32
    %422 = vector.broadcast %c0_i32_173 : i32 to vector<1x256xi32>
    %423 = arith.cmpi sge, %421, %422 : vector<1x256xi32>
    %c1_i32_174 = arith.constant 1 : i32
    %424 = vector.broadcast %c1_i32_174 : i32 to vector<1x256xi32>
    %425 = arith.addi %0, %424 : vector<1x256xi32>
    %c16_i32_175 = arith.constant 16 : i32
    %426 = vector.broadcast %c16_i32_175 : i32 to vector<1x256xi32>
    %427 = arith.cmpi slt, %425, %426 : vector<1x256xi32>
    %428 = arith.andi %423, %427 : vector<1x256xi1>
    %c1_i32_176 = arith.constant 1 : i32
    %429 = vector.broadcast %c1_i32_176 : i32 to vector<1x256xi32>
    %430 = arith.addi %1, %429 : vector<1x256xi32>
    %c0_i32_177 = arith.constant 0 : i32
    %431 = vector.broadcast %c0_i32_177 : i32 to vector<1x256xi32>
    %432 = arith.cmpi sge, %430, %431 : vector<1x256xi32>
    %433 = arith.andi %428, %432 : vector<1x256xi1>
    %c1_i32_178 = arith.constant 1 : i32
    %434 = vector.broadcast %c1_i32_178 : i32 to vector<1x256xi32>
    %435 = arith.addi %1, %434 : vector<1x256xi32>
    %c16_i32_179 = arith.constant 16 : i32
    %436 = vector.broadcast %c16_i32_179 : i32 to vector<1x256xi32>
    %437 = arith.cmpi slt, %435, %436 : vector<1x256xi32>
    %438 = arith.andi %433, %437 : vector<1x256xi1>
    %cst_180 = arith.constant 0.000000e+00 : f32
    %439 = vector.shape_cast %438 : vector<1x256xi1> to vector<1x256xi1>
    %440 = vector.broadcast %439 : vector<1x256xi1> to vector<16x256xi1>
    %441 = vector.broadcast %cst_180 : f32 to vector<16x256xf32>
    %442 = arith.select %440, %419, %441 : vector<16x256xi1>, vector<16x256xf32>
    %443 = tpu.concatenate %251, %275, %299, %323, %346, %370, %394, %418, %442 in 0 : vector<16x256xf32>, vector<16x256xf32>, vector<16x256xf32>, vector<16x256xf32>, vector<16x256xf32>, vector<16x256xf32>, vector<16x256xf32>, vector<16x256xf32>, vector<16x256xf32> -> vector<144x256xf32>
    %cst_181 = arith.constant dense<0.000000e+00> : vector<16x256xf32>
    %444 = tpu.matmul %227, %443, %cst_181 {dimension_numbers = #tpu.dot_dimension_numbers<[1], [0], [0], [1], [0, 0, 1, 1], [], []>} : vector<16x144xf32>, vector<144x256xf32>, vector<16x256xf32> -> vector<16x256xf32>
    %c0_182 = arith.constant 0 : index
    %c0_183 = arith.constant 0 : index
    %445 = vector.load %arg8[%c0_182, %c0_183] : memref<16x1xf32, #tpu.memory_space<vmem>>, vector<16x1xf32>
    %446 = vector.broadcast %445 : vector<16x1xf32> to vector<16x256xf32>
    %447 = arith.addf %444, %446 : vector<16x256xf32>
    %cst_184 = arith.constant dense<0.000000e+00> : vector<16xf32>
    %448 = vector.multi_reduction <add>, %447, %cst_184 [1] : vector<16x256xf32> to vector<16xf32>
    %449 = vector.shape_cast %448 : vector<16xf32> to vector<16x1xf32>
    %cst_185 = arith.constant 2.560000e+02 : f32
    %450 = vector.broadcast %cst_185 : f32 to vector<16x1xf32>
    %451 = arith.divf %449, %450 : vector<16x1xf32>
    %c0_186 = arith.constant 0 : index
    %c0_187 = arith.constant 0 : index
    %452 = vector.load %arg9[%c0_186, %c0_187] : memref<16x4xf32, #tpu.memory_space<vmem>>, vector<16x4xf32>
    %453 = vector.broadcast %451 : vector<16x1xf32> to vector<16x4xf32>
    %454 = arith.mulf %452, %453 : vector<16x4xf32>
    %cst_188 = arith.constant dense<0.000000e+00> : vector<4xf32>
    %455 = vector.multi_reduction <add>, %454, %cst_188 [0] : vector<16x4xf32> to vector<4xf32>
    %456 = vector.shape_cast %455 : vector<4xf32> to vector<1x4xf32>
    %c0_189 = arith.constant 0 : index
    %c0_190 = arith.constant 0 : index
    %457 = vector.load %arg10[%c0_189, %c0_190] : memref<1x4xf32, #tpu.memory_space<vmem>>, vector<1x4xf32>
    %458 = arith.addf %456, %457 : vector<1x4xf32>
    %cst_191 = arith.constant 0.000000e+00 : f32
    %459 = vector.broadcast %cst_191 : f32 to vector<1x4xf32>
    %460 = arith.maximumf %458, %459 : vector<1x4xf32>
    %c0_192 = arith.constant 0 : index
    %c0_193 = arith.constant 0 : index
    %461 = vector.load %arg11[%c0_192, %c0_193] : memref<16x4xf32, #tpu.memory_space<vmem>>, vector<16x4xf32>
    %462 = vector.broadcast %460 : vector<1x4xf32> to vector<16x4xf32>
    %463 = arith.mulf %461, %462 : vector<16x4xf32>
    %cst_194 = arith.constant dense<0.000000e+00> : vector<16xf32>
    %464 = vector.multi_reduction <add>, %463, %cst_194 [1] : vector<16x4xf32> to vector<16xf32>
    %465 = vector.shape_cast %464 : vector<16xf32> to vector<16x1xf32>
    %c0_195 = arith.constant 0 : index
    %c0_196 = arith.constant 0 : index
    %466 = vector.load %arg12[%c0_195, %c0_196] : memref<16x1xf32, #tpu.memory_space<vmem>>, vector<16x1xf32>
    %467 = arith.addf %465, %466 : vector<16x1xf32>
    %468 = arith.negf %467 : vector<16x1xf32>
    %469 = math.exp %468 : vector<16x1xf32>
    %cst_197 = arith.constant 1.000000e+00 : f32
    %470 = vector.broadcast %cst_197 : f32 to vector<16x1xf32>
    %471 = arith.addf %470, %469 : vector<16x1xf32>
    %472 = arith.divf %470, %471 : vector<16x1xf32>
    %473 = vector.broadcast %472 : vector<16x1xf32> to vector<16x256xf32>
    %474 = arith.mulf %447, %473 : vector<16x256xf32>
    %475 = arith.addf %474, %3 : vector<16x256xf32>
    %c0_198 = arith.constant 0 : index
    %c0_199 = arith.constant 0 : index
    %c0_200 = arith.constant 0 : index
    %476 = vector.load %arg13[%c0_198, %c0_199, %c0_200] : memref<1x16x256xf32, #tpu.memory_space<vmem>>, vector<1x16x256xf32>
    %477 = vector.shape_cast %476 : vector<1x16x256xf32> to vector<16x256xf32>
    %478 = vector.shape_cast %475 : vector<16x256xf32> to vector<1x16x256xf32>
    tpu.vector_store %arg13[%c0_198, %c0_199, %c0_200], %478 {strides = array<i32>} : memref<1x16x256xf32, #tpu.memory_space<vmem>>, vector<1x16x256xf32>,
    return
  }
  func.func @transform_0(%arg0: i32) -> (i32, i32, i32) {
    %c0_i32 = arith.constant 0 : i32
    %c0_i32_0 = arith.constant 0 : i32
    %c0_i32_1 = arith.constant 0 : i32
    return %arg0, %c0_i32, %c0_i32_0 : i32, i32, i32
  }
  func.func @transform_1(%arg0: i32) -> (i32, i32) {
    %c0_i32 = arith.constant 0 : i32
    %c0_i32_0 = arith.constant 0 : i32
    %c0_i32_1 = arith.constant 0 : i32
    return %c0_i32, %c0_i32_0 : i32, i32
  }
  func.func @transform_2(%arg0: i32) -> (i32, i32) {
    %c0_i32 = arith.constant 0 : i32
    %c0_i32_0 = arith.constant 0 : i32
    %c0_i32_1 = arith.constant 0 : i32
    return %c0_i32, %c0_i32_0 : i32, i32
  }
  func.func @transform_3(%arg0: i32) -> (i32, i32) {
    %c0_i32 = arith.constant 0 : i32
    %c0_i32_0 = arith.constant 0 : i32
    %c0_i32_1 = arith.constant 0 : i32
    return %c0_i32, %c0_i32_0 : i32, i32
  }
  func.func @transform_4(%arg0: i32) -> (i32, i32) {
    %c0_i32 = arith.constant 0 : i32
    %c0_i32_0 = arith.constant 0 : i32
    %c0_i32_1 = arith.constant 0 : i32
    return %c0_i32, %c0_i32_0 : i32, i32
  }
  func.func @transform_5(%arg0: i32) -> (i32, i32) {
    %c0_i32 = arith.constant 0 : i32
    %c0_i32_0 = arith.constant 0 : i32
    %c0_i32_1 = arith.constant 0 : i32
    return %c0_i32, %c0_i32_0 : i32, i32
  }
  func.func @transform_6(%arg0: i32) -> (i32, i32) {
    %c0_i32 = arith.constant 0 : i32
    %c0_i32_0 = arith.constant 0 : i32
    %c0_i32_1 = arith.constant 0 : i32
    return %c0_i32, %c0_i32_0 : i32, i32
  }
  func.func @transform_7(%arg0: i32) -> (i32, i32) {
    %c0_i32 = arith.constant 0 : i32
    %c0_i32_0 = arith.constant 0 : i32
    %c0_i32_1 = arith.constant 0 : i32
    return %c0_i32, %c0_i32_0 : i32, i32
  }
  func.func @transform_8(%arg0: i32) -> (i32, i32) {
    %c0_i32 = arith.constant 0 : i32
    %c0_i32_0 = arith.constant 0 : i32
    %c0_i32_1 = arith.constant 0 : i32
    return %c0_i32, %c0_i32_0 : i32, i32
  }
  func.func @transform_9(%arg0: i32) -> (i32, i32) {
    %c0_i32 = arith.constant 0 : i32
    %c0_i32_0 = arith.constant 0 : i32
    %c0_i32_1 = arith.constant 0 : i32
    return %c0_i32, %c0_i32_0 : i32, i32
  }
  func.func @transform_10(%arg0: i32) -> (i32, i32) {
    %c0_i32 = arith.constant 0 : i32
    %c0_i32_0 = arith.constant 0 : i32
    %c0_i32_1 = arith.constant 0 : i32
    return %c0_i32, %c0_i32_0 : i32, i32
  }
  func.func @transform_11(%arg0: i32) -> (i32, i32) {
    %c0_i32 = arith.constant 0 : i32
    %c0_i32_0 = arith.constant 0 : i32
    %c0_i32_1 = arith.constant 0 : i32
    return %c0_i32, %c0_i32_0 : i32, i32
  }
  func.func @transform_12(%arg0: i32) -> (i32, i32, i32) {
    %c0_i32 = arith.constant 0 : i32
    %c0_i32_0 = arith.constant 0 : i32
    %c0_i32_1 = arith.constant 0 : i32
    return %arg0, %c0_i32, %c0_i32_0 : i32, i32, i32
  }
}

</mosaic_0001>

<bundles_post_ra>
// kernel: tpu_custom_call.1
= control target key start
LH: loop header
LB: loop body
LE: loop exit
PB: predicated region body
PF: predicated region fallthrough
CT: control target
= control target key end

     0   :  { %s2605_s0 = inlined_call_operand.vmem [shape: f32[2,16,256], index: 0, kind: input, shape index: {}]   ;;  %s2606_s1 = inlined_call_operand.hbm [shape: s32[1,256], index: 1, kind: input, shape index: {}]   ;;  %s2607_s2 = inlined_call_operand.hbm [shape: s32[1,256], index: 2, kind: input, shape index: {}]   ;;  %s2608_s3 = inlined_call_operand.hbm [shape: s32[1,256], index: 3, kind: input, shape index: {}]   ;;  %s2609_s4 = inlined_call_operand.vmem [shape: f32[16,144], index: 4, kind: input, shape index: {}]   ;;  %s2610_s5 = inlined_call_operand.vmem [shape: f32[16,1], index: 5, kind: input, shape index: {}]   ;;  %s2611_s6 = inlined_call_operand.hbm [shape: f32[16,144], index: 6, kind: input, shape index: {}]   ;;  %s2612_s7 = inlined_call_operand.vmem [shape: f32[16,1], index: 7, kind: input, shape index: {}]   ;;  %s2613_s8 = inlined_call_operand.vmem [shape: f32[16,4], index: 8, kind: input, shape index: {}]   ;;  %s2614_s9 = inlined_call_operand.vmem [shape: f32[1,4], index: 9, kind: input, shape index: {}]   ;;  %s2615_s10 = inlined_call_operand.vmem [shape: f32[16,4], index: 10, kind: input, shape index: {}]   ;;  %s2616_s11 = inlined_call_operand.vmem [shape: f32[16,1], index: 11, kind: input, shape index: {}]   ;;  %s2617_s12 = inlined_call_operand.hbm [shape: f32[2,16,256], index: 12, kind: output, shape index: {}]  }
   0x1   :  { %2656 = sst [smem:[#allocation16_spill]] %s2605_s0 }
   0x2   :  { %2657 = sst [smem:[#allocation17_spill]] %s2606_s1 }
   0x3   :  { %17 = vsyncpa [#allocation3], 0 }
   0x4   :  { %18 = vsyncpa [#allocation6], 0 }
   0x5   :  { %19 = vsyncpa [#allocation9], 0 }
   0x6   :  { %20 = vsyncpa [#allocation4], 0 }
   0x7   :  { %22 = vsyncpa [#allocation4 + $0x1], 0  ;;  %s1741_s21 = smov 0   ;;  %s1743_s22 = smov 0  }
   0x8   :  { %s1745_s23 = smov 0   ;;  %s1747_s24 = smov 0  }
   0x9 LB: > { %s1762_s25 = sadd.s32 4294967295, %s1657_s24   ;;  %s1279_s26 = sadd.s32 4294967294, %s1657_s24   ;;  %s1657_s24 = sphi %s1747_s24, %s2771_s24   ;;  %s1653_s23 = sphi %s1745_s23, %s2770_s23   ;;  %s1649_s22 = sphi %s1743_s22, %s2769_s22   ;;  %s1645_s21 = sphi %s1741_s21, %s2768_s21  }
   0xa   : > { %s1766_s27 = sadd.s32 1, %s1657_s24   ;;  %s292_s28 = sadd.s32 1, %s1653_s23 }
   0xb   : > { %s289_s29 = ssub.s32 %s1657_s24, %s1766_s27  ;;  %p302_p0 = scmp.ne.s32.totalorder %s1653_s23, %s1649_s22 }
   0xc   : > { %p290_p1 = scmp.eq.s32.totalorder %s289_s29, 0  ;;  %p303_p2 = scmp.eq.s32.totalorder %s1762_s25, 1 }
   0xd   : > { %p308_p3 = scmp.ne.s32.totalorder %s1649_s22, %s1645_s21  ;;  %p309_p4 = scmp.eq.s32.totalorder %s1279_s26, 1 }
   0xe   : > { %s1777_s30 = scalar_select %p290_p1, %s1653_s23, %s292_s28  }
   0xf   : > { %p1779_p5 = por %p303_p2, %p302_p0  ;;  %p1783_p6 = por %p309_p4, %p308_p3 }
  0x10   : > { %2658 = sst [smem:[#allocation15_spill]] %s1777_s30  ;;  %p1280_p7 = scmp.ge.s32.totalorder %s1657_s24, 1 }
  0x11   : > { %s2659_s13 = scalar_select %p1779_p5, 1, 0 }
  0x12   : > { %s2660_s14 = scalar_select %p1783_p6, 1, 0 }
  0x13   : > { %p316_p8 = scmp.lt.s32.totalorder %s1657_s24, 3  ;;  %p2618_p9 = scmp.eq.s32.totalorder %s1762_s25, 0 }
  0x14   : > { %s1659_s16 = smov [#allocation5]   ;;  %s1660_s18 = smov [#allocation2]  }
  0x15   : > { %p1790_p10 = pnand %p1280_p7, %p316_p8  ;;  %s340_s17 = sshll.u32 %s1659_s16, 4  ;;  %s341_s17 = int_to_ptr.vmem [resolvable:$true] %s340_s17 }
  0x16   : > { %s329_s19 = sshll.u32 %s1660_s18, 4  ;;  %s1661_s26 = smov [#allocation7]   ;;  %s330_s19 = int_to_ptr.vmem [resolvable:$true] %s329_s19 }
  0x17   : > { %s2661_s15 = scalar_select %p1790_p10, 1, 0 }
  0x18   : > { %p1397_p11 = pneg %p1790_p10  ;;  %s351_s28 = sshll.u32 %s1661_s26, 4  ;;  %s1802_s28 = int_to_ptr.vmem [resolvable:$true] %s351_s28 }
  0x19   : > { %s1492_s29 = scalar_lea.vmem %s341_s17, 32  ;;  %p1500_p3 = scmp.lt.s32.totalorder %s341_s17, %s341_s17 }
  0x1a   : > { %p1798_p12 = pnand %p2618_p9, %p1397_p11  ;;  %p1493_p0 = scmp.ne.s32.totalorder %s341_s17, %s1492_s29 }
  0x1b   : > { %p1501_p4 = scmp.lt.s32.totalorder %s1492_s29, %s1492_s29 }
  0x1c   : > { %p1483_p13 = pneg %p1798_p12 }
  0x1d   : > { %p1502_p7 = por %p1501_p4, %p1500_p3 }
  0x1e   : > { %p1495_p1 = pnand %p1493_p0, %p1483_p13 }
  0x20   : > { %p1496_p2 = pneg %p1495_p1 }
  0x22   : > { %p1503_p8 = pnand %p1502_p7, %p1496_p2 }
  0x24   : > { %1506 = shalt.err (!%p1503_p8)
}
  0x25   : > { %1403 = dma.hbm_to_vmem [thread:$0]  (!%p1798_p12), %s2607_s2, 32, %s341_s17, [#allocation6]  }
  0x26   : > { %s1518_s26 = scalar_lea.vmem %s330_s19, 32  ;;  %p1526_p0 = scmp.lt.s32.totalorder %s330_s19, %s330_s19 }
  0x27   : > { %p1519_p11 = scmp.ne.s32.totalorder %s330_s19, %s1518_s26  ;;  %p1527_p1 = scmp.lt.s32.totalorder %s1518_s26, %s1518_s26 }
  0x29   : > { %p1521_p9 = pnand %p1519_p11, %p1483_p13  ;;  %p1528_p5 = por %p1527_p1, %p1526_p0 }
  0x2b   : > { %p1522_p6 = pneg %p1521_p9 }
  0x2d   : > { %p1529_p10 = pnand %p1528_p5, %p1522_p6 }
  0x2f   : > { %1532 = shalt.err (!%p1529_p10)
}
  0x30   : > { %s2663_s1 = sld [smem:[#allocation17_spill]]  ;;  %s1544_s17 = scalar_lea.vmem %s1802_s28, 32 }
  0x31   : > { %p1545_p2 = scmp.ne.s32.totalorder %s1802_s28, %s1544_s17  ;;  %p1552_p4 = scmp.lt.s32.totalorder %s1802_s28, %s1802_s28 }
  0x32   : > { %p1553_p5 = scmp.lt.s32.totalorder %s1544_s17, %s1544_s17 }
  0x33   : > { %p1547_p9 = pnand %p1545_p2, %p1483_p13 }
  0x34   : > { %p1554_p6 = por %p1553_p5, %p1552_p4 }
  0x35   : > { %p1548_p3 = pneg %p1547_p9 }
  0x36   : > { %1400 = dma.hbm_to_vmem [thread:$0]  (!%p1798_p12), %s2663_s1, 32, %s330_s19, [#allocation3]  }
  0x37   : > { %p1555_p10 = pnand %p1554_p6, %p1548_p3 }
  0x39   : > { %1558 = shalt.err (!%p1555_p10)
}
  0x3a   : > { %1406 = dma.hbm_to_vmem [thread:$0]  (!%p1798_p12), %s2608_s3, 32, %s1802_s28, [#allocation6]  }
  0x3b   : > { %s1662_s19 = smov [#allocation8]  }
  0x3c   : > { %s367_s18 = sshll.u32 %s1662_s19, 4  ;;  %s368_s18 = int_to_ptr.vmem [resolvable:$true] %s367_s18 }
  0x3d   : > { %s1570_s26 = scalar_lea.vmem %s368_s18, 512  ;;  %p1578_p0 = scmp.lt.s32.totalorder %s368_s18, %s368_s18 }
  0x3e   : > { %p1571_p7 = scmp.ne.s32.totalorder %s368_s18, %s1570_s26  ;;  %p1579_p1 = scmp.lt.s32.totalorder %s1570_s26, %s1570_s26 }
  0x40   : > { %p1573_p8 = pnand %p1571_p7, %p1483_p13  ;;  %p1580_p2 = por %p1579_p1, %p1578_p0 }
  0x42   : > { %p1574_p11 = pneg %p1573_p8 }
  0x44   : > { %p1581_p9 = pnand %p1580_p2, %p1574_p11 }
  0x46   : > { %1584 = shalt.err (!%p1581_p9)
}
  0x47   : > { %s1663_s29 = smov 256   ;;  %s1664_s17 = smov 16  }
  0x48   : > { %1409 = dma.hbm_to_vmem [thread:$0]  (!%p1798_p12), %s2611_s6, 512, %s368_s18, [#allocation9], %s1663_s29, %s1663_s29, %s1664_s17  }
  0x49   : > { %p2664_p3 = scmp.ne.s32.totalorder %s2661_s15, 0 }
  0x4a   : > { %p2665_p4 = scmp.eq.s32.totalorder (!%p2664_p3), %s1762_s25, 0 }
  0x4b   : > { %406 = sbr.rel (%p2664_p3) target bundleno = 1334 (0x536), region = 68 }
  0x50   : > { %1628 = dma.done.wait (%p2665_p4), [#allocation3], 32   ;;  %p2666_p13 = pmov %p2665_p4 }
  0x51   : > { %p2667_p5 = pmov %p2665_p4 }
  0x52   : > { %1630 = vsyncadd (%p2666_p13), [#allocation3], 4294967264 }
  0x53   : > { %1632 = dma.done.wait (%p2667_p5), [#allocation6], 64   ;;  %p2668_p6 = pmov %p2665_p4 }
  0x54   : > { %p2669_p10 = pmov %p2665_p4 }
  0x55   : > { %1634 = vsyncadd (%p2668_p6), [#allocation6], 4294967232 }
  0x56   : > { %1636 = dma.done.wait (%p2669_p10), [#allocation9], 512   ;;  %p2670_p12 = pmov %p2665_p4 }
  0x57   : > { %p460_p7 = scmp.lt.s32.totalorder %s1762_s25, 1  ;;  %v1665_v0 = vmov 0   ;;  %s2671_s0 = sld [smem:[#allocation16_spill]]  ;;  %v472_v5 = vld [vmem:[%s2609_s4 + $0x8] sm:$0xff]  ;;  %vm2625_vm0 = vcmask 130048   ;;  %v753_v6 = vld [vmem:[%s2610_s5] sm:$0xff]  ;;  %v483_v11 = vlaneseq }
  0x58   : > { %1638 = vsyncadd (%p2670_p12), [#allocation9], 4294966784  ;;  %1472 = vset.pattern.permute.xlu1 %v1665_v0  ;;  %1471 = vset.pattern.permute.xlu0 %v1665_v0  ;;  %s1666_s26 = smov 112   ;;  %s1667_s29 = smov 113   ;;  %v754_v7 = vld [vmem:[%s2610_s5 + $0x8] sm:$0xff]  ;;  %v2697_v21 = vmov 0 }
  0x59   : > { %s461_s15 = scalar_select %p460_p7, %s1762_s25, 1  ;;  %1330 = vmatprep.mubr.msk.f32.mxu0 %vm2625_vm0, %v472_v5  ;;  %v465_v8 = vld [vmem:[#allocation2] sm:$0x3]  ;;  %v1946_v10 = vld [vmem:[#allocation5] sm:$0x3]  ;;  %v501_v14 = vshrl.u32 %v483_v11, 7 }
  0x5a   : > { %s1668_s17 = smov 127   ;;  %s1669_s30 = smov 1   ;;  %v672_v9 = vadd.s32 1, %v465_v8  ;;  %vm2627_vm3 = vcmp.ge.s32.totalorder %v1946_v10, 0  ;;  %v1954_v13 = vadd.s32 4294967295, %v1946_v10  ;;  %vm2630_vm5 = vcmp.lt.s32.totalorder %v1946_v10, 16 }
  0x5b   : > { %s1377_s20 = sshll.u32 %s461_s15, 5  ;;  %s2623_s28 = smov 15   ;;  %v1969_v15 = vsub.s32 1, %v501_v14  ;;  %v1972_v16 = vadd.s32 1, %v1946_v10  ;;  %v1974_v17 = vsub.s32 0, %v501_v14  ;;  %vm592_vm11 = vcmp.ge.s32.totalorder %v465_v8, 0 }
  0x5c   : > { %s2621_s15 = smov 16   ;;  %vm673_vm1 = vcmp.ge.s32.totalorder %v672_v9, 0  ;;  %vm674_vm2 = vcmp.lt.s32.totalorder %v672_v9, 16  ;;  %vm2629_vm7 = vcmp.ge.s32.totalorder %v1954_v13, 0  ;;  %vm2634_vm9 = vcmp.lt.s32.totalorder %v1954_v13, 16  ;;  %s1378_s16 = sshll.u32 %s1762_s25, 9 }
  0x5d   : > { %s464_s18 = scalar_lea.vmem %s2671_s0, %s1377_s20  ;;  %s2650_s20 = smov 17   ;;  %vm1949_vm4 = vmand %vm673_vm1, %vm674_vm2  ;;  %vm593_vm12 = vcmp.lt.s32.totalorder %v465_v8, 16  ;;  %v1979_v19 = vand.u32 127, %v483_v11  ;;  %vm2633_vm14 = vcmp.ge.s32.totalorder %v1972_v16, 0  ;;  %vm2628_vm2 = vcmp.lt.s32.totalorder %v1972_v16, 16 }
  0x5e   : > { %v1864_v1 = vld [vmem:[%s464_s18 + $0x10] sm:$0xff]  ;;  %v1866_v2 = vld [vmem:[%s464_s18] sm:$0xff]  ;;  %v1872_v3 = vld [vmem:[%s464_s18 + $0x18] sm:$0xff]  ;;  %v490_v41 = vadd.s32 4294967295, %v465_v8  ;;  %v2693_v8 = vmov 0  ;;  %p2765_p11 = scmp.ne.s32.totalorder %s2659_s13, 0 }
  0x5f   : > { %695 = vrot.lane.b32.xlu0 %v1864_v1, %s1666_s26  ;;  %693 = vrot.lane.b32.xlu1 %v1866_v2, %s1666_s26  ;;  %v1874_v4 = vld [vmem:[%s464_s18 + $0x8] sm:$0xff]  ;;  %s2648_s18 = smov 111   ;;  %vm706_vm6 = vmand %vm1949_vm4, %vm2627_vm3  ;;  %vm2626_vm1 = vcmp.lt.s32.totalorder %v1979_v19, 112 }
  0x60   : > { %vm707_vm8 = vmand %vm706_vm6, %vm2630_vm5 }
  0x61   : > { %vm676_vm10 = vmand %vm1949_vm4, %vm2629_vm7  ;;  %v708_v18 = vsel %vm707_vm8, 1, %v1665_v0 }
  0x62   : > { %vm677_vm13 = vmand %vm676_vm10, %vm2634_vm9  ;;  %v716_v20 = vrot.slane %v708_v18, %v1969_v15  ;;  %v712_v24 = vrot.slane %v708_v18, %v1974_v17 }
  0x63   : > { %699 = vrot.lane.b32.xlu0 %v1872_v3, %s1666_s26  ;;  %697 = vrot.lane.b32.xlu1 %v1874_v4, %s1666_s26  ;;  %vm1983_vm15 = vmand %vm592_vm11, %vm593_vm12  ;;  %v678_v25 = vsel %vm677_vm13, 1, %v1665_v0  ;;  %vm2631_vm12 = vcmp.lt.s32.totalorder %v1979_v19, 113 }
  0x64   : > { %vm642_vm6 = vmand %vm1983_vm15, %vm2633_vm14  ;;  %vm1995_vm8 = vcmp.eq.s32.totalorder %v716_v20, 1  ;;  %v686_v27 = vrot.slane %v678_v25, %v1969_v15  ;;  %vm2000_vm10 = vcmp.eq.s32.totalorder %v712_v24, 1  ;;  %v682_v31 = vrot.slane %v678_v25, %v1974_v17 }
  0x65   : > { %vm643_vm11 = vmand %vm642_vm6, %vm2628_vm2  ;;  %vm492_vm2 = vcmp.lt.s32.totalorder %v490_v41, 16  ;;  %v2695_v20 = vmov 0 }
  0x66   : > { %vm2018_vm13 = vcmp.eq.s32.totalorder %v686_v27, 1  ;;  %vm612_vm6 = vmand %vm1983_vm15, %vm2627_vm3  ;;  %vm2030_vm0 = vcmp.eq.s32.totalorder %v682_v31, 1  ;;  %v644_v40 = vsel %vm643_vm11, 1, %v1665_v0  ;;  %vm491_vm3 = vcmp.ge.s32.totalorder %v490_v41, 0 }
  0x67   : > { %661 = vrot.lane.b32.xlu0 %v1864_v1, %s1667_s29  ;;  %665 = vrot.lane.b32.xlu1 %v1872_v3, %s1667_s29  ;;  %v652_v44 = vrot.slane %v644_v40, %v1969_v15  ;;  %vm595_vm11 = vmand %vm1983_vm15, %vm2629_vm7  ;;  %v648_v47 = vrot.slane %v644_v40, %v1974_v17 }
  0x68   : > { %vm596_vm15 = vmand %vm595_vm11, %vm2634_vm9 }
  0x69   : > { %vm2065_vm7 = vcmp.eq.s32.totalorder %v652_v44, 1  ;;  %v597_v60 = vsel %vm596_vm15, 1, %v1665_v0 }
  0x6a   : > { %v601_v9 = vrot.slane %v597_v60, %v1974_v17 }
  0x6b   : > { %659 = vrot.lane.b32.xlu0 %v1866_v2, %s1667_s29  ;;  %663 = vrot.lane.b32.xlu1 %v1874_v4, %s1667_s29 }
  0x6f   : > { %631 = vrot.lane.b32.xlu0 %v1864_v1, %s1668_s17  ;;  %635 = vrot.lane.b32.xlu1 %v1872_v3, %s1668_s17 }
  0x73   : > { %629 = vrot.lane.b32.xlu0 %v1866_v2, %s1668_s17  ;;  %633 = vrot.lane.b32.xlu1 %v1874_v4, %s1668_s17 }
  0x77   : > { %581 = vrot.lane.b32.xlu0 %v1864_v1, %s1669_s30  ;;  %585 = vrot.lane.b32.xlu1 %v1872_v3, %s1669_s30 }
  0x7b   : > { %579 = vrot.lane.b32.xlu0 %v1866_v2, %s1669_s30  ;;  %583 = vrot.lane.b32.xlu1 %v1874_v4, %s1669_s30 }
  0x7f   : > { %548 = vrot.lane.b32.xlu0 %v1864_v1, %s2623_s28  ;;  %552 = vrot.lane.b32.xlu1 %v1872_v3, %s2623_s28 }
  0x83   : > { %546 = vrot.lane.b32.xlu0 %v1866_v2, %s2623_s28  ;;  %550 = vrot.lane.b32.xlu1 %v1874_v4, %s2623_s28  ;;  %s2724_s28 = smov 17  }
  0x87   : > { %516 = vrot.lane.b32.xlu0 %v1864_v1, %s2621_s15  ;;  %520 = vrot.lane.b32.xlu1 %v1872_v3, %s2621_s15 }
  0x8b   : > { %514 = vrot.lane.b32.xlu0 %v1866_v2, %s2621_s15  ;;  %518 = vrot.lane.b32.xlu1 %v1874_v4, %s2621_s15 }
  0x8f   : > { %477 = vrot.lane.b32.xlu0 %v1864_v1, %s2650_s20  ;;  %481 = vrot.lane.b32.xlu1 %v1872_v3, %s2650_s20 }
  0x93   : > { %475 = vrot.lane.b32.xlu0 %v1866_v2, %s2650_s20  ;;  %479 = vrot.lane.b32.xlu1 %v1874_v4, %s2650_s20  ;;  %s2722_s20 = smov 15  }
  0x97   : > { %725 = vrot.lane.b32.xlu0 %v1864_v1, %s2648_s18  ;;  %729 = vrot.lane.b32.xlu1 %v1872_v3, %s2648_s18 }
  0x9b   : > { %723 = vrot.lane.b32.xlu0 %v1866_v2, %s2648_s18  ;;  %727 = vrot.lane.b32.xlu1 %v1874_v4, %s2648_s18  ;;  %s2723_s18 = smov 16  }
  0x9f   : > { %757 = vperm.xlu1 %1472, %v753_v6   ;;  %762 = vperm.xlu0 %1471, %v754_v7   ;;  %v2690_v6 = vmov 0  ;;  %v605_v7 = vrot.slane %v597_v60, %v1969_v15 }
  0xd1   : > { %v696_v22 = vpop.permute.xlu0 %695  ;;  %v694_v23 = vpop.permute.xlu1 %693 }
  0xd5   : > { %v700_v28 = vpop.permute.xlu0 %699  ;;  %v698_v29 = vpop.permute.xlu1 %697 }
  0xd6   : > { %v705_v32 = vsel %vm2626_vm1, %v700_v28, %v696_v22  ;;  %v703_v33 = vsel %vm2626_vm1, %v696_v22, %v700_v28  ;;  %v704_v34 = vsel %vm2626_vm1, %v698_v29, %v694_v23  ;;  %v702_v36 = vsel %vm2626_vm1, %v694_v23, %v698_v29  ;;  %vm613_vm1 = vmand %vm612_vm6, %vm2630_vm5 }
  0xd7   : > { %1294 = vmatprep.subr.msk.mxu0 %vm1995_vm8, %v705_v32  ;;  %vm2632_vm6 = vcmp.lt.s32.totalorder %v1979_v19, 127  ;;  %v614_v50 = vsel %vm613_vm1, 1, %v1665_v0  ;;  %vm2069_vm5 = vmand %vm491_vm3, %vm492_vm2  ;;  %vm2692_vm2 = vcmp.lt.s32.totalorder %v1972_v16, 16 }
  0xd8   : > { %1295 = vmatpush1.msk.msra.mxu0 %vm2000_vm10, %v703_v33  ;;  %v622_v58 = vrot.slane %v614_v50, %v1969_v15  ;;  %v618_v59 = vrot.slane %v614_v50, %v1974_v17  ;;  %vm561_vm3 = vmand %vm2069_vm5, %vm2633_vm14  ;;  %vm2699_vm14 = vcmp.ge.s32.totalorder %v1946_v10, 0 }
  0xd9   : > { %v662_v37 = vpop.permute.xlu0 %661  ;;  %v666_v38 = vpop.permute.xlu1 %665  ;;  %1296 = vmatprep.subr.msk.mxu0 %vm1995_vm8, %v704_v34  ;;  %vm563_vm11 = vmand %vm561_vm3, %vm2692_vm2  ;;  %vm2120_vm3 = vcmp.eq.s32.totalorder %v605_v7, 1  ;;  %vm2127_vm2 = vcmp.eq.s32.totalorder %v601_v9, 1 }
  0xda   : > { %v669_v42 = vsel %vm2631_vm12, %v662_v37, %v666_v38  ;;  %v671_v43 = vsel %vm2631_vm12, %v666_v38, %v662_v37  ;;  %1297 = vmatpush1.msk.msra.mxu0 %vm2000_vm10, %v702_v36  ;;  %vm2096_vm1 = vcmp.eq.s32.totalorder %v622_v58, 1  ;;  %vm2105_vm15 = vcmp.eq.s32.totalorder %v618_v59, 1 }
  0xdb   : > { %1298 = vmatprep.subr.msk.mxu0 %vm2018_vm13, %v671_v43  ;;  %v2691_v6 = vsel %vm2096_vm1, 4294967295, %v2690_v6  ;;  %v2694_v8 = vsel %vm2105_vm15, 4294967295, %v2693_v8  ;;  %v564_v18 = vsel %vm563_vm11, 1, %v1665_v0  ;;  %v2696_v20 = vsel %vm2120_vm3, 4294967295, %v2695_v20  ;;  %vm528_vm11 = vmand %vm2069_vm5, %vm2699_vm14 }
  0xdc   : > { %1299 = vmatpush1.msk.msra.mxu0 %vm2030_vm0, %v669_v42  ;;  %v2698_v21 = vsel %vm2127_vm2, 4294967295, %v2697_v21  ;;  %v572_v23 = vrot.slane %v564_v18, %v1969_v15  ;;  %v568_v28 = vrot.slane %v564_v18, %v1974_v17  ;;  %vm2700_vm14 = vcmp.lt.s32.totalorder %v1946_v10, 16 }
  0xdd   : > { %v660_v45 = vpop.permute.xlu0 %659  ;;  %v664_v46 = vpop.permute.xlu1 %663  ;;  %vm530_vm9 = vmand %vm528_vm11, %vm2700_vm14  ;;  %v2703_v36 = vmov 0  ;;  %vm2705_vm11 = vcmp.ge.s32.totalorder %v1954_v13, 0 }
  0xde   : > { %v668_v48 = vsel %vm2631_vm12, %v660_v45, %v664_v46  ;;  %v670_v49 = vsel %vm2631_vm12, %v664_v46, %v660_v45  ;;  %vm2073_vm12 = vcmp.eq.s32.totalorder %v648_v47, 1  ;;  %v531_v10 = vsel %vm530_vm9, 1, %v1665_v0  ;;  %vm496_vm14 = vmand %vm2069_vm5, %vm2705_vm11 }
  0xdf   : > { %1300 = vmatprep.subr.msk.mxu0 %vm2018_vm13, %v670_v49  ;;  %v539_v40 = vrot.slane %v531_v10, %v1969_v15  ;;  %v535_v43 = vrot.slane %v531_v10, %v1974_v17  ;;  %vm2706_vm9 = vcmp.lt.s32.totalorder %v1954_v13, 16  ;;  %vm2653_vm5 = vcmp.lt.s32.totalorder %v1979_v19, 16  ;;  %v474_v10 = vld [vmem:[%s2609_s4 + $0x18] sm:$0xff] }
  0xe0   : > { %1301 = vmatpush1.msk.msra.mxu0 %vm2030_vm0, %v668_v48 }
  0xe1   : > { %v632_v53 = vpop.permute.xlu0 %631  ;;  %v636_v54 = vpop.permute.xlu1 %635  ;;  %vm2193_vm11 = vcmp.eq.s32.totalorder %v539_v40, 1 }
  0xe2   : > { %v639_v56 = vsel %vm2632_vm6, %v632_v53, %v636_v54  ;;  %v641_v57 = vsel %vm2632_vm6, %v636_v54, %v632_v53 }
  0xe3   : > { %1302 = vmatprep.subr.msk.mxu0 %vm2065_vm7, %v641_v57 }
  0xe4   : > { %1303 = vmatpush1.msk.msra.mxu0 %vm2073_vm12, %v639_v56 }
  0xe5   : > { %v630_v61 = vpop.permute.xlu0 %629  ;;  %v634_v62 = vpop.permute.xlu1 %633 }
  0xe6   : > { %v638_v63 = vsel %vm2632_vm6, %v630_v61, %v634_v62  ;;  %v640_v5 = vsel %vm2632_vm6, %v634_v62, %v630_v61  ;;  %vm2639_vm6 = vcmp.lt.s32.totalorder %v1979_v19, 1  ;;  %v856_v62 = vld [vmem:[#allocation8 + $0x18] sm:$0xff] }
  0xe7   : > { %1304 = vmatprep.subr.msk.mxu0 %vm2065_vm7, %v640_v5 }
  0xe8   : > { %1305 = vmatpush1.msk.msra.mxu0 %vm2073_vm12, %v638_v63 }
  0xe9   : > { %v582_v11 = vpop.permute.xlu0 %581  ;;  %v586_v14 = vpop.permute.xlu1 %585  ;;  %1306 = vmatprep.subr.msk.mxu0 %vm2096_vm1, %v1872_v3 }
  0xea   : > { %1307 = vmatpush1.msk.msra.mxu0 %vm2105_vm15, %v1864_v1  ;;  %v589_v22 = vsel %vm2639_vm6, %v582_v11, %v586_v14  ;;  %v591_v24 = vsel %vm2639_vm6, %v586_v14, %v582_v11 }
  0xeb   : > { %1308 = vmatprep.subr.msk.mxu0 %vm2096_vm1, %v1874_v4  ;;  %vm2159_vm1 = vcmp.eq.s32.totalorder %v572_v23, 1 }
  0xec   : > { %1309 = vmatpush1.msk.msra.mxu0 %vm2105_vm15, %v1866_v2  ;;  %vm2644_vm15 = vcmp.lt.s32.totalorder %v1979_v19, 15 }
  0xed   : > { %v580_v25 = vpop.permute.xlu0 %579  ;;  %v584_v27 = vpop.permute.xlu1 %583  ;;  %1310 = vmatprep.subr.msk.mxu0 %vm2120_vm3, %v589_v22 }
  0xee   : > { %v588_v29 = vsel %vm2639_vm6, %v580_v25, %v584_v27  ;;  %v590_v31 = vsel %vm2639_vm6, %v584_v27, %v580_v25  ;;  %1311 = vmatpush1.msk.msra.mxu0 %vm2127_vm2, %v591_v24  ;;  %vm2163_vm6 = vcmp.eq.s32.totalorder %v568_v28, 1  ;;  %v2719_v24 = vmov 0 }
  0xef   : > { %1312 = vmatprep.subr.msk.mxu0 %vm2120_vm3, %v588_v29  ;;  %v2704_v36 = vsel %vm2163_vm6, 4294967295, %v2703_v36  ;;  %vm2197_vm3 = vcmp.eq.s32.totalorder %v535_v43, 1 }
  0xf0   : > { %1313 = vmatpush1.msk.msra.mxu0 %vm2127_vm2, %v590_v31  ;;  %vm498_vm2 = vmand %vm496_vm14, %vm2706_vm9  ;;  %vm2711_vm14 = vcmp.ge.s32.totalorder %v1972_v16, 0 }
  0xf1   : > { %v549_v33 = vpop.permute.xlu0 %548  ;;  %v553_v34 = vpop.permute.xlu1 %552  ;;  %v499_v13 = vsel %vm498_vm2, 1, %v1665_v0  ;;  %vm736_vm9 = vmand %vm1949_vm4, %vm2711_vm14  ;;  %vm2712_vm2 = vcmp.lt.s32.totalorder %v1972_v16, 16  ;;  %vm2647_vm4 = vcmp.lt.s32.totalorder %v1979_v19, 17 }
  0xf2   : > { %v556_v37 = vsel %vm2644_vm15, %v549_v33, %v553_v34  ;;  %v558_v38 = vsel %vm2644_vm15, %v553_v34, %v549_v33  ;;  %v507_v53 = vrot.slane %v499_v13, %v1969_v15  ;;  %v503_v57 = vrot.slane %v499_v13, %v1974_v17  ;;  %v471_v34 = vld [vmem:[%s2609_s4] sm:$0xff] }
  0xf3   : > { %1314 = vmatprep.subr.msk.mxu0 %vm2159_vm1, %v556_v37  ;;  %v473_v37 = vld [vmem:[%s2609_s4 + $0x10] sm:$0xff] }
  0xf4   : > { %1315 = vmatpush1.msk.msra.mxu0 %vm2163_vm6, %v558_v38  ;;  %vm2227_vm14 = vcmp.eq.s32.totalorder %v507_v53, 1 }
  0xf5   : > { %v547_v41 = vpop.permute.xlu0 %546  ;;  %v551_v42 = vpop.permute.xlu1 %550 }
  0xf6   : > { %v555_v44 = vsel %vm2644_vm15, %v547_v41, %v551_v42  ;;  %v557_v45 = vsel %vm2644_vm15, %v551_v42, %v547_v41  ;;  %vm737_vm15 = vmand %vm736_vm9, %vm2712_vm2 }
  0xf7   : > { %1316 = vmatprep.subr.msk.mxu0 %vm2159_vm1, %v555_v44  ;;  %v738_v16 = vsel %vm737_vm15, 1, %v1665_v0  ;;  %vm2652_vm15 = vcmp.lt.s32.totalorder %v1979_v19, 111 }
  0xf8   : > { %1317 = vmatpush1.msk.msra.mxu0 %vm2163_vm6, %v557_v45  ;;  %vm2231_vm6 = vcmp.eq.s32.totalorder %v503_v57, 1  ;;  %v746_v7 = vrot.slane %v738_v16, %v1969_v15  ;;  %v742_v14 = vrot.slane %v738_v16, %v1974_v17  ;;  %v989_v57 = vld [vmem:[%s2612_s7] sm:$0xff] }
  0xf9   : > { %v517_v47 = vpop.permute.xlu0 %516  ;;  %v521_v48 = vpop.permute.xlu1 %520 }
  0xfa   : > { %v524_v50 = vsel %vm2653_vm5, %v517_v47, %v521_v48  ;;  %v526_v52 = vsel %vm2653_vm5, %v521_v48, %v517_v47  ;;  %vm2255_vm9 = vcmp.eq.s32.totalorder %v746_v7, 1  ;;  %vm2259_vm2 = vcmp.eq.s32.totalorder %v742_v14, 1 }
  0xfb   : > { %1318 = vmatprep.subr.msk.mxu0 %vm2193_vm11, %v524_v50  ;;  %v2720_v24 = vsel %vm2259_vm2, 4294967295, %v2719_v24 }
  0xfc   : > { %1319 = vmatpush1.msk.msra.mxu0 %vm2197_vm3, %v526_v52 }
  0xfd   : > { %v515_v54 = vpop.permute.xlu0 %514  ;;  %v519_v56 = vpop.permute.xlu1 %518 }
  0xfe   : > { %v523_v58 = vsel %vm2653_vm5, %v515_v54, %v519_v56  ;;  %v525_v59 = vsel %vm2653_vm5, %v519_v56, %v515_v54  ;;  %v854_v56 = vld [vmem:[#allocation8 + $0x8] sm:$0xff] }
  0xff   : > { %1320 = vmatprep.subr.msk.mxu0 %vm2193_vm11, %v523_v58  ;;  %v990_v58 = vld [vmem:[%s2612_s7 + $0x8] sm:$0xff] }
 0x100   : > { %1321 = vmatpush1.msk.msra.mxu0 %vm2197_vm3, %v525_v59 }
 0x101   : > { %v478_v60 = vpop.permute.xlu0 %477  ;;  %v482_v61 = vpop.permute.xlu1 %481 }
 0x102   : > { %v487_v63 = vsel %vm2647_vm4, %v478_v60, %v482_v61  ;;  %v489_v5 = vsel %vm2647_vm4, %v482_v61, %v478_v60 }
 0x103   : > { %1322 = vmatprep.subr.msk.mxu0 %vm2227_vm14, %v487_v63 }
 0x104   : > { %1323 = vmatpush1.msk.msra.mxu0 %vm2231_vm6, %v489_v5 }
 0x105   : > { %v476_v9 = vpop.permute.xlu0 %475  ;;  %v480_v11 = vpop.permute.xlu1 %479 }
 0x106   : > { %v486_v0 = vsel %vm2647_vm4, %v476_v9, %v480_v11  ;;  %v488_v18 = vsel %vm2647_vm4, %v480_v11, %v476_v9  ;;  %vm2721_vm4 = vcmask 130048  }
 0x107   : > { %1324 = vmatprep.subr.msk.mxu0 %vm2227_vm14, %v486_v0  ;;  %1368 = vmatprep.mubr.msk.f32.mxu1 %vm2721_vm4, %v854_v56 }
 0x108   : > { %1325 = vmatpush1.msk.msra.mxu0 %vm2231_vm6, %v488_v18 }
 0x109   : > { %v726_v22 = vpop.permute.xlu0 %725  ;;  %v730_v23 = vpop.permute.xlu1 %729 }
 0x10a   : > { %v733_v25 = vsel %vm2652_vm15, %v726_v22, %v730_v23  ;;  %v735_v27 = vsel %vm2652_vm15, %v730_v23, %v726_v22 }
 0x10b   : > { %1326 = vmatprep.subr.msk.mxu0 %vm2255_vm9, %v735_v27 }
 0x10c   : > { %1327 = vmatpush2.msk.msra.mxu0 %vm2259_vm2, %v733_v25 }
 0x10d   : > { %v724_v28 = vpop.permute.xlu0 %723  ;;  %v728_v29 = vpop.permute.xlu1 %727 }
 0x10e   : > { %v732_v31 = vsel %vm2652_vm15, %v724_v28, %v728_v29  ;;  %v734_v33 = vsel %vm2652_vm15, %v728_v29, %v724_v28 }
 0x10f   : > { %1328 = vmatprep.subr.msk.mxu0 %vm2255_vm9, %v734_v33 }
 0x110   : > { %1329 = vmatpush2.msk.msra.mxu0 %vm2259_vm2, %v732_v31 }
 0x111   : > { %837 = vmatmul.mubr.f32.vlgmr.msra.gmra.mxu0 %v471_v34 }
 0x112   : > { %1331 = vmatprep.mubr.msk.f32.mxu0 %vm2721_vm4, %v474_v10  ;;  %vm2726_vm4 = vcmp.lt.s32.totalorder %v1979_v19, 112 }
 0x113   : > { %vm2727_vm15 = vmmov %vm2726_vm4 }
 0x114   : > { %vm2728_vm5 = vmmov %vm2726_vm4 }
 0x115   : > { %843 = vmatmul.mubr.f32.gmra.mxu0 %v473_v37  ;;  %vm2729_vm2 = vmmov %vm2726_vm4 }
 0x11a   : > { %v758_v38 = vpop.permute.xlu1 %757  ;;  %v763_v48 = vpop.permute.xlu0 %762 }
 0x1d1   : > { %v838_v40 = vpop.f32.mrf.mxu0 }
 0x1d2   : > { %v839_v41 = vadd.f32 %v838_v40, %v758_v38 }
 0x1d3   : > { %v840_v42 = vpop.f32.mrf.mxu0 }
 0x1d4   : > { %v2289_v43 = vmax.f32 %v839_v41, 0.0  ;;  %v841_v44 = vadd.f32 %v840_v42, %v758_v38 }
 0x1d5   : > { %v844_v47 = vpop.f32.mrf.mxu0 }
 0x1d6   : > { %v2291_v45 = vmax.f32 %v841_v44, 0.0  ;;  %957 = vrot.lane.b32.xlu1 %v2289_v43, %s1666_s26  ;;  %v845_v13 = vadd.f32 %v844_v47, %v763_v48 }
 0x1d7   : > { %v846_v50 = vpop.f32.mrf.mxu0 }
 0x1d8   : > { %961 = vrot.lane.b32.xlu0 %v2291_v45, %s1666_s26  ;;  %v2313_v52 = vmax.f32 %v845_v13, 0.0  ;;  %v847_v53 = vadd.f32 %v846_v50, %v763_v48 }
 0x1da   : > { %941 = vrot.lane.b32.xlu1 %v2289_v43, %s1667_s29  ;;  %v2319_v54 = vmax.f32 %v847_v53, 0.0 }
 0x1dc   : > { %945 = vrot.lane.b32.xlu0 %v2291_v45, %s1667_s29 }
 0x1de   : > { %925 = vrot.lane.b32.xlu1 %v2289_v43, %s1668_s17 }
 0x1e0   : > { %929 = vrot.lane.b32.xlu0 %v2291_v45, %s1668_s17 }
 0x1e2   : > { %905 = vrot.lane.b32.xlu1 %v2289_v43, %s1669_s30 }
 0x1e4   : > { %909 = vrot.lane.b32.xlu0 %v2291_v45, %s1669_s30 }
 0x1e6   : > { %889 = vrot.lane.b32.xlu1 %v2289_v43, %s2722_s20 }
 0x1e8   : > { %893 = vrot.lane.b32.xlu0 %v2291_v45, %s2722_s20 }
 0x1ea   : > { %873 = vrot.lane.b32.xlu1 %v2289_v43, %s2723_s18 }
 0x1ec   : > { %877 = vrot.lane.b32.xlu0 %v2291_v45, %s2723_s18 }
 0x1ee   : > { %959 = vrot.lane.b32.xlu1 %v2313_v52, %s1666_s26 }
 0x1f0   : > { %963 = vrot.lane.b32.xlu0 %v2319_v54, %s1666_s26  ;;  %s2725_s26 = smov 111  }
 0x1f2   : > { %943 = vrot.lane.b32.xlu1 %v2313_v52, %s1667_s29 }
 0x1f4   : > { %947 = vrot.lane.b32.xlu0 %v2319_v54, %s1667_s29  ;;  %s457_s29 = sand.u32 1, %s1649_s22  }
 0x1f6   : > { %927 = vrot.lane.b32.xlu1 %v2313_v52, %s1668_s17 }
 0x1f8   : > { %931 = vrot.lane.b32.xlu0 %v2319_v54, %s1668_s17  ;;  %s1291_s17 = sshll.u32 %s457_s29, 5 }
 0x1fa   : > { %857 = vrot.lane.b32.xlu1 %v2289_v43, %s2724_s28 }
 0x1fc   : > { %861 = vrot.lane.b32.xlu0 %v2291_v45, %s2724_s28 }
 0x1fe   : > { %907 = vrot.lane.b32.xlu1 %v2313_v52, %s1669_s30 }
 0x200   : > { %911 = vrot.lane.b32.xlu0 %v2319_v54, %s1669_s30  ;;  %s459_s30 = scalar_lea.vmem [#allocation10], %s1291_s17  ;;  %s1674_s17 = smov [#allocation10]  }
 0x201   : > { %s1176_s15 = sshll.u32 %s459_s30, 4  ;;  %s1589_s0 = sshll.u32 %s1674_s17, 4  ;;  %s2553_s15 = int_to_ptr.vmem [resolvable:$true] %s1176_s15  ;;  %s1590_s0 = int_to_ptr.vmem [resolvable:$false] %s1589_s0 }
 0x202   : > { %891 = vrot.lane.b32.xlu1 %v2313_v52, %s2722_s20  ;;  %s1591_s1 = scalar_lea.vmem %s1590_s0, 1024  ;;  %p1592_p2 = scmp.lt.s32.totalorder %s2553_s15, %s1590_s0 }
 0x204   : > { %895 = vrot.lane.b32.xlu0 %v2319_v54, %s2722_s20  ;;  %s2562_s20 = scalar_lea.hbm %s2617_s12, %s1378_s16 }
 0x206   : > { %875 = vrot.lane.b32.xlu1 %v2313_v52, %s2723_s18 }
 0x208   : > { %879 = vrot.lane.b32.xlu0 %v2319_v54, %s2723_s18 }
 0x20a   : > { %859 = vrot.lane.b32.xlu1 %v2313_v52, %s2724_s28 }
 0x20c   : > { %863 = vrot.lane.b32.xlu0 %v2319_v54, %s2724_s28  ;;  %s2564_s28 = scalar_lea.sflag [#allocation4], %s457_s29 }
 0x20e   : > { %975 = vrot.lane.b32.xlu1 %v2313_v52, %s2725_s26 }
 0x210   : > { %979 = vrot.lane.b32.xlu0 %v2319_v54, %s2725_s26 }
 0x212   : > { %973 = vrot.lane.b32.xlu1 %v2289_v43, %s2725_s26 }
 0x214   : > { %977 = vrot.lane.b32.xlu0 %v2291_v45, %s2725_s26  ;;  %s1585_s26 = scalar_lea.vmem %s2553_s15, 512 }
 0x215   : > { %p1586_p8 = scmp.ne.s32.totalorder %s2553_s15, %s1585_s26  ;;  %p1593_p9 = scmp.lt.s32.totalorder %s1591_s1, %s1585_s26 }
 0x216   : > { %993 = vperm.xlu1 %1472, %v989_v57  }
 0x217   : > { %p1587_p0 = pnand %p1586_p8, %p2765_p11  ;;  %p1594_p3 = por %p1593_p9, %p1592_p2 }
 0x218   : > { %998 = vperm.xlu0 %1471, %v990_v58  }
 0x219   : > { %p1588_p1 = pneg %p1587_p0 }
 0x21b   : > { %p1595_p4 = pnand %p1594_p3, %p1588_p1 }
 0x248   : > { %v958_v59 = vpop.permute.xlu1 %957 }
 0x24a   : > { %v962_v60 = vpop.permute.xlu0 %961 }
 0x24b   : > { %v967_v29 = vsel %vm2728_vm5, %v962_v60, %v958_v59  ;;  %v965_v31 = vsel %vm2729_vm2, %v958_v59, %v962_v60  ;;  %vm2734_vm2 = vcmp.lt.s32.totalorder %v1979_v19, 127 }
 0x24c   : > { %v942_v61 = vpop.permute.xlu1 %941 }
 0x24e   : > { %v946_v16 = vpop.permute.xlu0 %945 }
 0x250   : > { %v926_v63 = vpop.permute.xlu1 %925 }
 0x252   : > { %v930_v5 = vpop.permute.xlu0 %929 }
 0x254   : > { %v906_v7 = vpop.permute.xlu1 %905 }
 0x256   : > { %v910_v9 = vpop.permute.xlu0 %909 }
 0x258   : > { %v890_v11 = vpop.permute.xlu1 %889 }
 0x25a   : > { %v894_v14 = vpop.permute.xlu0 %893 }
 0x25c   : > { %v2368_v0 = vpop.permute.xlu1 %873 }
 0x25e   : > { %v2370_v18 = vpop.permute.xlu0 %877 }
 0x260   : > { %v960_v22 = vpop.permute.xlu1 %959 }
 0x262   : > { %v964_v23 = vpop.permute.xlu0 %963 }
 0x263   : > { %v968_v25 = vsel %vm2726_vm4, %v964_v23, %v960_v22  ;;  %v966_v27 = vsel %vm2727_vm15, %v960_v22, %v964_v23  ;;  %vm2730_vm4 = vcmp.lt.s32.totalorder %v1979_v19, 113 }
 0x264   : > { %1332 = vmatprep.subr.msk.mxu1 %vm1995_vm8, %v968_v25  ;;  %v944_v28 = vpop.permute.xlu1 %943  ;;  %vm2731_vm15 = vmmov %vm2730_vm4 }
 0x265   : > { %1333 = vmatpush1.msk.msra.mxu1 %vm2000_vm10, %v966_v27  ;;  %vm2732_vm5 = vmmov %vm2730_vm4 }
 0x266   : > { %v948_v33 = vpop.permute.xlu0 %947  ;;  %1334 = vmatprep.subr.msk.mxu1 %vm1995_vm8, %v967_v29  ;;  %v951_v38 = vsel %vm2732_vm5, %v946_v16, %v942_v61  ;;  %vm2733_vm8 = vmmov %vm2730_vm4  ;;  %vm2740_vm5 = vcmp.lt.s32.totalorder %v1979_v19, 1 }
 0x267   : > { %v950_v34 = vsel %vm2730_vm4, %v944_v28, %v948_v33  ;;  %v952_v10 = vsel %vm2731_vm15, %v948_v33, %v944_v28  ;;  %1335 = vmatpush1.msk.msra.mxu1 %vm2000_vm10, %v965_v31  ;;  %v949_v26 = vsel %vm2733_vm8, %v942_v61, %v946_v16  ;;  %vm2735_vm10 = vmmov %vm2734_vm2  ;;  %vm2739_vm15 = vnez %v2694_v8 }
 0x268   : > { %1336 = vmatprep.subr.msk.mxu1 %vm2018_vm13, %v952_v10  ;;  %v928_v37 = vpop.permute.xlu1 %927  ;;  %vm2736_vm4 = vmmov %vm2734_vm2 }
 0x269   : > { %1337 = vmatpush1.msk.msra.mxu1 %vm2030_vm0, %v950_v34  ;;  %v935_v44 = vsel %vm2736_vm4, %v930_v5, %v926_v63  ;;  %vm2743_vm8 = vmmov %vm2740_vm5  ;;  %vm2746_vm4 = vcmp.lt.s32.totalorder %v1979_v19, 15 }
 0x26a   : > { %v932_v40 = vpop.permute.xlu0 %931  ;;  %1338 = vmatprep.subr.msk.mxu1 %vm2018_vm13, %v951_v38  ;;  %vm2737_vm13 = vmmov %vm2734_vm2  ;;  %v913_v50 = vsel %vm2743_vm8, %v906_v7, %v910_v9  ;;  %v1094_v38 = vld [vmem:[%s2613_s8 + $0x8] sm:$0xff] }
 0x26b   : > { %v934_v30 = vsel %vm2734_vm2, %v928_v37, %v932_v40  ;;  %v936_v41 = vsel %vm2735_vm10, %v932_v40, %v928_v37  ;;  %1339 = vmatpush1.msk.msra.mxu1 %vm2030_vm0, %v949_v26  ;;  %v933_v35 = vsel %vm2737_vm13, %v926_v63, %v930_v5  ;;  %vm2738_vm0 = vnez %v2691_v6  ;;  %vm2745_vm10 = vmmov %vm2740_vm5  ;;  %v1093_v37 = vld [vmem:[%s2613_s8] sm:$0xff] }
 0x26c   : > { %1340 = vmatprep.subr.msk.mxu1 %vm2065_vm7, %v936_v41  ;;  %v858_v42 = vpop.permute.xlu1 %857  ;;  %vm2744_vm2 = vnez %v2698_v21  ;;  %v915_v6 = vsel %vm2745_vm10, %v910_v9, %v906_v7  ;;  %vm2747_vm13 = vmmov %vm2746_vm4 }
 0x26d   : > { %1341 = vmatpush1.msk.msra.mxu1 %vm2073_vm12, %v934_v30 }
 0x26e   : > { %v862_v47 = vpop.permute.xlu0 %861  ;;  %1342 = vmatprep.subr.msk.mxu1 %vm2065_vm7, %v935_v44  ;;  %vm2741_vm7 = vmmov %vm2740_vm5 }
 0x26f   : > { %1343 = vmatpush1.msk.msra.mxu1 %vm2073_vm12, %v933_v35  ;;  %vm2742_vm12 = vnez %v2696_v20 }
 0x270   : > { %1344 = vmatprep.subr.msk.mxu1 %vm2738_vm0, %v2319_v54  ;;  %v908_v39 = vpop.permute.xlu1 %907 }
 0x271   : > { %1345 = vmatpush1.msk.msra.mxu1 %vm2739_vm15, %v2313_v52 }
 0x272   : > { %v912_v48 = vpop.permute.xlu0 %911  ;;  %1346 = vmatprep.subr.msk.mxu1 %vm2738_vm0, %v2291_v45  ;;  %vm2748_vm0 = vmmov %vm2746_vm4 }
 0x273   : > { %v914_v51 = vsel %vm2740_vm5, %v908_v39, %v912_v48  ;;  %v916_v55 = vsel %vm2741_vm7, %v912_v48, %v908_v39  ;;  %1347 = vmatpush1.msk.msra.mxu1 %vm2739_vm15, %v2289_v43  ;;  %v897_v53 = vsel %vm2748_vm0, %v890_v11, %v894_v14  ;;  %vm2749_vm15 = vnez %v2704_v36  ;;  %vm2750_vm5 = vmmov %vm2748_vm0 }
 0x274   : > { %1348 = vmatprep.subr.msk.mxu1 %vm2742_vm12, %v914_v51  ;;  %v892_v13 = vpop.permute.xlu1 %891  ;;  %v899_v20 = vsel %vm2750_vm5, %v894_v14, %v890_v11  ;;  %vm2751_vm7 = vcmp.lt.s32.totalorder %v1979_v19, 16  ;;  %vm2761_vm0 = vnez %v2720_v24  ;;  %v853_v14 = vld [vmem:[#allocation8] sm:$0xff] }
 0x275   : > { %1349 = vmatpush1.msk.msra.mxu1 %vm2744_vm2, %v916_v55  ;;  %vm2753_vm8 = vmmov %vm2751_vm7 }
 0x276   : > { %v896_v45 = vpop.permute.xlu0 %895  ;;  %1350 = vmatprep.subr.msk.mxu1 %vm2742_vm12, %v913_v50  ;;  %vm2752_vm12 = vmmov %vm2751_vm7  ;;  %v881_v58 = vsel %vm2753_vm8, %v2368_v0, %v2370_v18 }
 0x277   : > { %v898_v8 = vsel %vm2746_vm4, %v892_v13, %v896_v45  ;;  %v900_v43 = vsel %vm2747_vm13, %v896_v45, %v892_v13  ;;  %1351 = vmatpush1.msk.msra.mxu1 %vm2744_vm2, %v915_v6  ;;  %vm2755_vm2 = vcmp.lt.s32.totalorder %v1979_v19, 17  ;;  %vm2759_vm13 = vcmp.lt.s32.totalorder %v1979_v19, 111  ;;  %v1107_v13 = vld [vmem:[%s2614_s9] sm:$0x1] }
 0x278   : > { %1352 = vmatprep.subr.msk.mxu1 %vm2159_vm1, %v898_v8  ;;  %v876_v52 = vpop.permute.xlu1 %875  ;;  %vm2756_vm10 = vmmov %vm2755_vm2  ;;  %v1111_v8 = vld [vmem:[%s2615_s10 + $0x8] sm:$0xff] }
 0x279   : > { %1353 = vmatpush1.msk.msra.mxu1 %vm2749_vm15, %v900_v43  ;;  %vm2757_vm4 = vmmov %vm2755_vm2  ;;  %v1110_v43 = vld [vmem:[%s2615_s10] sm:$0xff] }
 0x27a   : > { %v880_v54 = vpop.permute.xlu0 %879  ;;  %1354 = vmatprep.subr.msk.mxu1 %vm2159_vm1, %v897_v53  ;;  %vm2754_vm1 = vmmov %vm2751_vm7  ;;  %v865_v16 = vsel %vm2757_vm4, %v858_v42, %v862_v47 }
 0x27b   : > { %v882_v21 = vsel %vm2751_vm7, %v876_v52, %v880_v54  ;;  %v884_v56 = vsel %vm2752_vm12, %v880_v54, %v876_v52  ;;  %1355 = vmatpush1.msk.msra.mxu1 %vm2749_vm15, %v899_v20  ;;  %v883_v32 = vsel %vm2754_vm1, %v2370_v18, %v2368_v0  ;;  %v855_v0 = vld [vmem:[#allocation8 + $0x10] sm:$0xff] }
 0x27c   : > { %1356 = vmatprep.subr.msk.mxu1 %vm2193_vm11, %v882_v21  ;;  %v860_v57 = vpop.permute.xlu1 %859 }
 0x27d   : > { %1357 = vmatpush1.msk.msra.mxu1 %vm2197_vm3, %v884_v56  ;;  %v1125_v56 = vld [vmem:[%s2616_s11 + $0x8] sm:$0xff] }
 0x27e   : > { %v864_v59 = vpop.permute.xlu0 %863  ;;  %1358 = vmatprep.subr.msk.mxu1 %vm2193_vm11, %v881_v58  ;;  %vm2758_vm11 = vmmov %vm2755_vm2 }
 0x27f   : > { %v866_v36 = vsel %vm2755_vm2, %v860_v57, %v864_v59  ;;  %v868_v60 = vsel %vm2756_vm10, %v864_v59, %v860_v57  ;;  %1359 = vmatpush1.msk.msra.mxu1 %vm2197_vm3, %v883_v32  ;;  %v867_v46 = vsel %vm2758_vm11, %v862_v47, %v858_v42  ;;  %vm2760_vm3 = vmmov %vm2759_vm13  ;;  %v1124_v57 = vld [vmem:[%s2616_s11] sm:$0xff] }
 0x280   : > { %1360 = vmatprep.subr.msk.mxu1 %vm2227_vm14, %v866_v36  ;;  %v976_v61 = vpop.permute.xlu1 %975  ;;  %vm2762_vm15 = vmmov %vm2760_vm3 }
 0x281   : > { %1361 = vmatpush1.msk.msra.mxu1 %vm2231_vm6, %v868_v60 }
 0x282   : > { %v980_v63 = vpop.permute.xlu0 %979  ;;  %1362 = vmatprep.subr.msk.mxu1 %vm2227_vm14, %v865_v16  ;;  %vm2763_vm14 = vmmov %vm2760_vm3 }
 0x283   : > { %v982_v49 = vsel %vm2759_vm13, %v976_v61, %v980_v63  ;;  %v984_v5 = vsel %vm2760_vm3, %v980_v63, %v976_v61  ;;  %1363 = vmatpush1.msk.msra.mxu1 %vm2231_vm6, %v867_v46  ;;  %vm2764_vm6 = vcmask 130048  }
 0x284   : > { %1364 = vmatprep.subr.msk.mxu1 %vm2255_vm9, %v984_v5  ;;  %v974_v7 = vpop.permute.xlu1 %973 }
 0x285   : > { %1365 = vmatpush2.msk.msra.mxu1 %vm2761_vm0, %v982_v49 }
 0x286   : > { %v978_v9 = vpop.permute.xlu0 %977 }
 0x287   : > { %v981_v12 = vsel %vm2762_vm15, %v974_v7, %v978_v9  ;;  %v983_v11 = vsel %vm2763_vm14, %v978_v9, %v974_v7 }
 0x288   : > { %1366 = vmatprep.subr.msk.mxu1 %vm2255_vm9, %v983_v11  ;;  %vm1097_vm9 = vcmask 31744  }
 0x289   : > { %1367 = vmatpush2.msk.msra.mxu1 %vm2761_vm0, %v981_v12 }
 0x28a   : > { %1072 = vmatmul.mubr.f32.vlgmr.msra.gmra.mxu1 %v853_v14 }
 0x28b   : > { %1369 = vmatprep.mubr.msk.f32.mxu1 %vm2764_vm6, %v856_v62 }
 0x28e   : > { %1078 = vmatmul.mubr.f32.gmra.mxu1 %v855_v0 }
 0x291   : > { %v994_v22 = vpop.permute.xlu1 %993 }
 0x293   : > { %v999_v28 = vpop.permute.xlu0 %998 }
 0x34a   : > { %v1073_v18 = vpop.f32.mrf.mxu1 }
 0x34b   : > { %v2517_v25 = vadd.f32 %v1073_v18, %v994_v22 }
 0x34c   : > { %v1075_v23 = vpop.f32.mrf.mxu1 }
 0x34d   : > { %v2519_v19 = vadd.f32 %v1075_v23, %v994_v22 }
 0x34e   : > { %v1079_v27 = vpop.f32.mrf.mxu1 }
 0x34f   : > { %v1084_v15 = vadd.f32 %v2519_v19, %v2517_v25  ;;  %v1080_v24 = vadd.f32 %v1079_v27, %v999_v28 }
 0x350   : > { %v1081_v29 = vpop.f32.mrf.mxu1 }
 0x351   : > { %v1082_v31 = vadd.f32 %v1081_v29, %v999_v28  ;;  %1085 = vadd.xlane.f32.xlu1 %v1084_v15 }
 0x353   : > { %v1087_v33 = vadd.f32 %v1082_v31, %v1080_v24 }
 0x355   : > { %1088 = vadd.xlane.f32.xlu0 %v1087_v33 }
 0x3da   : > { %v1086_v34 = vpop.xlane.xlu1 %1085 }
 0x3db   : > { %v1091_v10 = vmul.f32 0.00390625, %v1086_v34 }
 0x3dd   : > { %v1095_v40 = vmul.f32 %v1093_v37, %v1091_v10 }
 0x3de   : > { %v1089_v26 = vpop.xlane.xlu0 %1088 }
 0x3df   : > { %v1092_v30 = vmul.f32 0.00390625, %v1089_v26  ;;  %v1098_v42 = vsel %vm1097_vm9, %v1095_v40, 0.0 }
 0x3e1   : > { %v1096_v41 = vmul.f32 %v1094_v38, %v1092_v30 }
 0x3e3   : > { %v1099_v44 = vsel %vm1097_vm9, %v1096_v41, 0.0 }
 0x3e4   : > { %v1100_v35 = vadd.f32 %v1099_v44, %v1098_v42 }
 0x3e6   : > { %v1101_v47 = vrot.slane %v1100_v35, 4 }
 0x3e8   : > { %v1102_v39 = vadd.f32 %v1101_v47, %v1100_v35 }
 0x3ea   : > { %v1103_v48 = vrot.slane %v1102_v39, 2 }
 0x3ec   : > { %v1104_v51 = vadd.f32 %v1103_v48, %v1102_v39 }
 0x3ee   : > { %v1105_v55 = vrot.slane %v1104_v51, 1 }
 0x3f0   : > { %v1106_v50 = vadd.f32 %v1105_v55, %v1104_v51 }
 0x3f2   : > { %v1108_v6 = vadd.f32 %v1107_v13, %v1106_v50 }
 0x3f4   : > { %v1109_v45 = vmax.f32 %v1108_v6, 0.0 }
 0x3f6   : > { %v1115_v52 = vrot.slane %v1109_v45, %v1974_v17 }
 0x3f8   : > { %v1117_v53 = vmul.f32 %v1115_v52, %v1111_v8  ;;  %v1116_v20 = vmul.f32 %v1115_v52, %v1110_v43 }
 0x3fa   : > { %v1121_v54 = vsel %vm1097_vm9, %v1117_v53, 0.0  ;;  %v1118_v21 = vsel %vm1097_vm9, %v1116_v20, 0.0 }
 0x3fb   : > { %1122 = vadd.xlane.f32.xlu1 %v1121_v54  ;;  %1119 = vadd.xlane.f32.xlu0 %v1118_v21 }
 0x484   : > { %v1123_v58 = vpop.xlane.xlu1 %1122  ;;  %v1120_v32 = vpop.xlane.xlu0 %1119 }
 0x485   : > { %v1127_v59 = vadd.f32 %v1125_v56, %v1123_v58  ;;  %v1126_v17 = vadd.f32 %v1124_v57, %v1120_v32 }
 0x487   : > { %v1371_v36 = vmul.f32 -1.442695, %v1127_v59  ;;  %v1370_v60 = vmul.f32 -1.442695, %v1126_v17 }
 0x489   : > { %1473 = vpow2.f32 %v1371_v36 }
 0x48a   : > { %1475 = vpow2.f32 %v1370_v60 }
 0x496   : > { %v1474_v61 = vpop.eup %1473 }
 0x497   : > { %v1476_v16 = vpop.eup %1475  ;;  %v1135_v46 = vadd.f32 1.0, %v1474_v61 }
 0x498   : > { %v1134_v63 = vadd.f32 1.0, %v1476_v16 }
 0x499   : > { %1477 = vrcp.f32 %v1135_v46 }
 0x49a   : > { %1479 = vrcp.f32 %v1134_v63 }
 0x4a6   : > { %v1478_v49 = vpop.eup %1477 }
 0x4a7   : > { %v1480_v5 = vpop.eup %1479  ;;  %1147 = vperm.xlu1 %1472, %v1478_v49  }
 0x4a8   : > { %1142 = vperm.xlu0 %1471, %v1480_v5  }
 0x522   : > { %v1148_v7 = vpop.permute.xlu1 %1147 }
 0x523   : > { %v1152_v9 = vmul.f32 %v1148_v7, %v1080_v24  ;;  %v1153_v12 = vmul.f32 %v1148_v7, %v1082_v31  ;;  %v1143_v11 = vpop.permute.xlu0 %1142 }
 0x524   : > { %v1150_v14 = vmul.f32 %v1143_v11, %v2517_v25  ;;  %v1151_v62 = vmul.f32 %v1143_v11, %v2519_v19 }
 0x525   : > { %v1156_v0 = vadd.f32 %v1152_v9, %v1864_v1  ;;  %v1157_v18 = vadd.f32 %v1153_v12, %v1872_v3 }
 0x526   : > { %v1154_v22 = vadd.f32 %v1150_v14, %v1866_v2  ;;  %v1155_v23 = vadd.f32 %v1151_v62, %v1874_v4 }
 0x527   : > { %1160 = vst [vmem:[%s459_s30 + $0x10] sm:$0xff] %v1156_v0  ;;  %1161 = vst [vmem:[%s459_s30 + $0x18] sm:$0xff] %v1157_v18 }
 0x528   : > { %1158 = vst [vmem:[%s459_s30] sm:$0xff] %v1154_v22  ;;  %1159 = vst [vmem:[%s459_s30 + $0x8] sm:$0xff] %v1155_v23 }
 0x529   : > { %1598 = shalt.err (!%p1595_p4)
}
 0x52a   : > { %s1599_s29 = scalar_lea.hbm %s2562_s20, 512  ;;  %s1603_s19 = scalar_lea.hbm %s2617_s12, 1024 }
 0x52b   : > { %p1600_p13 = scmp.ne.s32.totalorder %s2562_s20, %s1599_s29  ;;  %p1604_p10 = scmp.lt.s32.totalorder %s2562_s20, %s2617_s12 }
 0x52c   : > { %p1605_p12 = scmp.lt.s32.totalorder %s1603_s19, %s1599_s29 }
 0x52d   : > { %p1601_p5 = pnand %p1600_p13, %p2765_p11 }
 0x52e   : > { %p1606_p7 = por %p1605_p12, %p1604_p10 }
 0x52f   : > { %p1602_p6 = pneg %p1601_p5 }
 0x531   : > { %p1607_p8 = pnand %p1606_p7, %p1602_p6 }
 0x533   : > { %1610 = shalt.err (!%p1607_p8)
}
 0x534   : > { %s1675_s0 = smov 256  }
 0x535   : > { %1395 = dma.vmem_to_hbm [thread:$0]  (%p2765_p11), %s2553_s15, 512, %s2562_s20, %s2564_s28, %s1675_s0, %s1675_s0, %s2723_s18  }
 0x536 PF: > { %p1422_p0 = scmp.ge.s32.totalorder %s1657_s24, 2  ;;  %s1191_s1 = sand.u32 1, %s1645_s21  }
 0x537   : > { %p2766_p1 = scmp.ne.s32.totalorder %s2660_s14, 0  ;;  %s1192_s26 = scalar_lea.sflag [#allocation4], %s1191_s1 }
 0x539   : > { %p1411_p2 = pnand %p1422_p0, %p2766_p1 }
 0x53b   : > { %p1412_p9 = pneg %p1411_p2 }
 0x53d   : > { %1640 = dma.done.wait (%p1412_p9), %s1192_s26, 512  }
 0x53e   : > { %1642 = vsyncadd (%p1412_p9), %s1192_s26, 4294966784  ;;  %s2767_s13 = sld [smem:[#allocation15_spill]]  ;;  %p25_p3 = scmp.ge.s32.totalorder %s1766_s27, 4  }
 0x53f   : > { %s2768_s21 = smov %s1649_s22  ;;  %s2769_s22 = smov %s1653_s23 }
 0x540   : > { %s2771_s24 = smov %s1766_s27  ;;  %27 = sbr.rel (!%p25_p3) target bundleno = 9 (0x9), region = 120 }
 0x544   : > { %s2770_s23 = smov %s2767_s13 }
 0x545   :  { %1197 = vsyncpa [#allocation3], 1 }
 0x546   :  { %1199 = vsyncpa [#allocation3 + $0x1], 1 }
 0x547   :  { %1200 = vsyncpa [#allocation6], 1 }
 0x548   :  { %1201 = vsyncpa [#allocation9], 1 }
 0x549   :  { %1202 = vsyncpa [#allocation4], 1 }
 0x54a   :  { %1204 = vsyncpa [#allocation4 + $0x1], 1 }

</bundles_post_ra>
